<compile_context>
chip_gen: v6e
topology: v6e:2x2x1
jax: 0.10.0
libtpu: 0.0.40
codegen_flags: <defaults>
</compile_context>

<pallas_src>
from functools import partial

import jax
import jax.numpy as jnp
from jax.experimental import pallas as pl
from jax.experimental.pallas import tpu as pltpu

_LANE = 128


def _ds_conv_kernel(x_hbm, wdw_ref, b1_ref, wpw_ref, b2_ref,
                    out_ref, xbuf, sem, *, W, K, TILE_H, pad, LPAD, WP):
    """One (batch, H-strip) tile per grid step.

    x_hbm  : (N, H, W, Cp)   unpadded NHWC input in HBM (manual halo DMA), cdt
    wdw_ref: (K, K, Cp)      depthwise weights, BN1 scale pre-folded, cdt
    b1_ref : (1, Cp)         BN1 bias, cdt
    wpw_ref: (Cp, Coutp)     pointwise weights, BN2 scale pre-folded, bf16
    b2_ref : (1, Coutp)      BN2 bias, f32
    out_ref: (1, TILE_H, W, Coutp)
    xbuf   : VMEM scratch (2, TILE_H + 2*pad, WP, Cp) cdt   (double buffer)
    sem    : DMA semaphores (2, 3)   [slot, {core, top, bottom}]
    """
    n = pl.program_id(0)
    i = pl.program_id(1)
    n_strips = pl.num_programs(1)

    R = TILE_H + 2 * pad
    Cp = wdw_ref.shape[-1]
    Coutp = out_ref.shape[-1]
    cdt = xbuf.dtype

    # ---------------- manual double-buffered halo-strip DMA (P4) ----------------
    def start_strip(it, slot):
        xb = xbuf.at[slot]
        # Zero-fill borders BEFORE starting DMAs into this slot (element/tile-disjoint
        # from the DMA destinations, and ordered ahead of the copy start).
        if pad > 0:
            @pl.when(it <= 1)        # border columns are never dirtied by DMAs:
            def _():                 # zero them once per slot (first two strips)
                xb[:, 0:LPAD, :] = jnp.zeros((R, LPAD, Cp), cdt)
                xb[:, LPAD + W:, :] = jnp.zeros((R, WP - (LPAD + W), Cp), cdt)

            @pl.when(it == 0)
            def _():
                xb[0:pad, :, :] = jnp.zeros((pad, WP, Cp), cdt)

            @pl.when(it == n_strips - 1)
            def _():
                xb[pad + TILE_H:, :, :] = jnp.zeros((pad, WP, Cp), cdt)

        row0 = it * TILE_H
        pltpu.make_async_copy(
            x_hbm.at[n, pl.ds(row0, TILE_H), :, :],
            xbuf.at[slot, pl.ds(pad, TILE_H), pl.ds(LPAD, W), :],
            sem.at[slot, 0]).start()

        if pad > 0:
            @pl.when(it > 0)
            def _():
                pltpu.make_async_copy(
                    x_hbm.at[n, pl.ds(row0 - pad, pad), :, :],
                    xbuf.at[slot, pl.ds(0, pad), pl.ds(LPAD, W), :],
                    sem.at[slot, 1]).start()

            @pl.when(it < n_strips - 1)
            def _():
                pltpu.make_async_copy(
                    x_hbm.at[n, pl.ds(row0 + TILE_H, pad), :, :],
                    xbuf.at[slot, pl.ds(pad + TILE_H, pad), pl.ds(LPAD, W), :],
                    sem.at[slot, 2]).start()

    def wait_strip(ic, slot):
        row0 = ic * TILE_H
        pltpu.make_async_copy(
            x_hbm.at[n, pl.ds(row0, TILE_H), :, :],
            xbuf.at[slot, pl.ds(pad, TILE_H), pl.ds(LPAD, W), :],
            sem.at[slot, 0]).wait()
        if pad > 0:
            @pl.when(ic > 0)
            def _():
                pltpu.make_async_copy(
                    x_hbm.at[n, pl.ds(row0 - pad, pad), :, :],
                    xbuf.at[slot, pl.ds(0, pad), pl.ds(LPAD, W), :],
                    sem.at[slot, 1]).wait()

            @pl.when(ic < n_strips - 1)
            def _():
                pltpu.make_async_copy(
                    x_hbm.at[n, pl.ds(row0 + TILE_H, pad), :, :],
                    xbuf.at[slot, pl.ds(pad + TILE_H, pad), pl.ds(LPAD, W), :],
                    sem.at[slot, 2]).wait()

    slot = i % 2

    # Prime the pipeline on the first strip of each batch (per-batch priming keeps
    # the scheme correct when the "parallel" batch axis is sharded across cores).
    @pl.when(i == 0)
    def _():
        start_strip(i, slot)

    # Prefetch the next strip of the same batch into the other slot.
    @pl.when(i + 1 < n_strips)
    def _():
        start_strip(i + 1, (i + 1) % 2)

    # Only wait on the current slot's copies before compute.
    wait_strip(i, slot)

    # ---------------- depthwise KxK, stride 1 (VPU; BN1 scale folded) ----------------
    xb = xbuf.at[slot]
    wdw = wdw_ref[...]                              # (K, K, Cp), compute dtype
    acc = None
    for dx in range(K):
        off = LPAD - pad + dx                       # center tap (dx == pad) is aligned
        xcol = xb[:, off:off + W, :]                # (R, W, Cp)
        for dy in range(K):
            term = xcol[dy:dy + TILE_H] * wdw[dy, dx][None, None, :]
            acc = term if acc is None else acc + term

    # ---------------- BN1 bias + ReLU ----------------
    y = jnp.maximum(acc + b1_ref[...].reshape(1, 1, Cp), 0.0)

    # TODO(synk): se_layer=None in this config -> SE block is Identity (omitted).

    # ---------- pointwise 1x1 conv == channel matmul (MXU, bf16 in / f32 acc) --------
    y2 = y.reshape(TILE_H * W, Cp).astype(jnp.bfloat16)
    z = jnp.dot(y2, wpw_ref[...], preferred_element_type=jnp.float32)
    z = z.reshape(TILE_H, W, Coutp) + b2_ref[...].reshape(1, 1, Coutp)   # BN2 bias

    # ---------- residual add (stride==1, in_chs==out_chs, drop_path_rate=0.0) --------
    shortcut = xb[pad:pad + TILE_H, LPAD:LPAD + W, :].astype(jnp.float32)
    out_ref[0] = (z + shortcut).astype(out_ref.dtype)


def _round_up(v, m):
    return ((v + m - 1) // m) * m


def _device_defaults():
    """Pick depthwise compute dtype + VMEM limit from the TPU generation."""
    kind = ""
    try:
        kind = jax.devices()[0].device_kind.lower()
    except Exception:
        pass
    bf16_dw = any(t in kind for t in ("v6", "v7", "7x"))      # bf16 VPU capable
    if any(t in kind for t in ("v7", "7x")):
        vmem_limit = 48 * 1024 * 1024          # v7x: 64 MiB physical, keep headroom
    elif any(t in kind for t in ("v6", "v5e", "v5 lite", "v5lite")):
        vmem_limit = 64 * 1024 * 1024          # 128 MiB physical: allow bigger strips
    else:
        vmem_limit = 32 * 1024 * 1024          # conservative default (unknown chip)
    return (jnp.bfloat16 if bf16_dw else jnp.float32), vmem_limit


def depthwise_separable_conv(x_nchw, params, dw_kernel_size=3, tile_h=None,
                             compute_dtype=None):
    """x_nchw: (N, C, H, W) float32 (PyTorch layout).

    params: (w_dw (K,K,C), s1 (1,C), b1 (1,C), w_pw (C,Cout), s2 (1,Cout), b2 (1,Cout))
    """
    w_dw, s1, b1, w_pw, s2, b2 = params
    N, C, H, W = x_nchw.shape
    K = dw_kernel_size
    pad = (K - 1) // 2
    Cout = w_pw.shape[1]
    assert C == Cout, "residual path requires in_chs == out_chs (module defaults)"

    auto_cdt, vmem_limit = _device_defaults()
    cdt = auto_cdt if compute_dtype is None else compute_dtype

    # lane-dense channel padding (multiples of 128)
    Cp = _round_up(C, _LANE)
    Coutp = _round_up(Cout, _LANE)

    # pick an H strip size: divisor of H, >= pad, <= target
    target = tile_h if tile_h is not None else 32
    cands = [d for d in range(1, H + 1)
             if H % d == 0 and d <= target and d >= max(pad, 1)]
    # TODO(synk): prime H with no divisor <= target falls back to one full-image strip.
    tile_h = max(cands) if cands else H
    n_strips = H // tile_h

    # sublane-aligned VMEM layout for the halo buffer
    itemsize = jnp.dtype(cdt).itemsize
    spack = 8 * 4 // itemsize                  # native sublane tile (8 f32 / 16 bf16)
    LPAD = spack                               # core columns start on a tile boundary
    WP = _round_up(LPAD + W + pad, spack)

    scratch_bytes = 2 * (tile_h + 2 * pad) * WP * Cp * itemsize
    assert scratch_bytes < vmem_limit, (
        f"halo scratch ({scratch_bytes} B) exceeds VMEM limit; lower tile_h")

    # NCHW -> NHWC (+ channel pad, compute dtype); NO spatial pad (done in-kernel)
    x = jnp.transpose(x_nchw, (0, 2, 3, 1))
    if Cp != C:
        x = jnp.pad(x, ((0, 0), (0, 0), (0, 0), (0, Cp - C)))
    x = x.astype(cdt)

    # fold BN scales into conv weights on the host (accuracy-neutral, saves 2 vmuls/step)
    w_dw_s = w_dw * s1.reshape(1, 1, C)
    w_pw_s = w_pw * s2.reshape(1, Cout)
    w_dw_p = jnp.pad(w_dw_s, ((0, 0), (0, 0), (0, Cp - C))).astype(cdt)
    b1_p = jnp.pad(b1, ((0, 0), (0, Cp - C))).astype(cdt)
    w_pw_p = jnp.pad(w_pw_s, ((0, Cp - C), (0, Coutp - Cout))).astype(jnp.bfloat16)
    b2_p = jnp.pad(b2, ((0, 0), (0, Coutp - Cout))).astype(jnp.float32)

    kernel = partial(_ds_conv_kernel, W=W, K=K, TILE_H=tile_h, pad=pad,
                     LPAD=LPAD, WP=WP)

    out = pl.pallas_call(
        kernel,
        out_shape=jax.ShapeDtypeStruct((N, H, W, Coutp), x_nchw.dtype),
        grid=(N, n_strips),
        in_specs=[
            pl.BlockSpec(memory_space=pl.ANY),                   # x: HBM, manual DMA
            pl.BlockSpec((K, K, Cp), lambda n, i: (0, 0, 0)),    # dw weights (folded)
            pl.BlockSpec((1, Cp), lambda n, i: (0, 0)),          # BN1 bias
            pl.BlockSpec((Cp, Coutp), lambda n, i: (0, 0)),      # pw weights (bf16)
            pl.BlockSpec((1, Coutp), lambda n, i: (0, 0)),       # BN2 bias
        ],
        out_specs=pl.BlockSpec((1, tile_h, W, Coutp), lambda n, i: (n, i, 0, 0)),
        scratch_shapes=[
            pltpu.VMEM((2, tile_h + 2 * pad, WP, Cp), cdt),      # double-buffered strips
            pltpu.SemaphoreType.DMA((2, 3)),
        ],
        compiler_params=pltpu.CompilerParams(
            # strip axis must stay sequential for cross-step double buffering;
            # the batch axis may be sharded across TensorCores (v7x).
            dimension_semantics=("parallel", "arbitrary"),
            vmem_limit_bytes=vmem_limit,
        ),
    )(x, w_dw_p, b1_p, w_pw_p, b2_p)

    out = out[..., :Cout]                       # drop channel padding
    return jnp.transpose(out, (0, 3, 1, 2))     # NHWC -> NCHW


def _reference(x, w_dw_oihw, s1, b1, w_pw_oihw, s2, b2, K):
    """Pure-JAX NCHW reference mirroring the PyTorch forward (f32 throughout)."""
    C = x.shape[1]
    pad = (K - 1) // 2
    dw = jax.lax.conv_general_dilated(
        x, w_dw_oihw, window_strides=(1, 1), padding=[(pad, pad), (pad, pad)],
        feature_group_count=C, dimension_numbers=("NCHW", "OIHW", "NCHW"))
    y = jnp.maximum(dw * s1.reshape(1, -1, 1, 1) + b1.reshape(1, -1, 1, 1), 0.0)
    pw = jax.lax.conv_general_dilated(
        y, w_pw_oihw, window_strides=(1, 1), padding=[(0, 0), (0, 0)],
        dimension_numbers=("NCHW", "OIHW", "NCHW"))
    z = pw * s2.reshape(1, -1, 1, 1) + b2.reshape(1, -1, 1, 1)
    return z + x


if __name__ == "__main__":
    key = jax.random.PRNGKey(0)
    N, C, H, W = 2, 4, 16, 16
    K = 3
    Cout = C  # in_chs == out_chs -> residual path active
    eps = 1e-5

    ks = jax.random.split(key, 12)
    x = jax.random.normal(ks[0], (N, C, H, W), jnp.float32)

    # conv_dw weight (PyTorch shape (C, 1, K, K), bias=False since followed by BN)
    w_dw_oihw = 0.1 * jax.random.normal(ks[1], (C, 1, K, K), jnp.float32)
    w_dw = jnp.transpose(w_dw_oihw[:, 0], (1, 2, 0))  # -> (K, K, C)

    # bn1 eval params, folded into scale/bias
    g1 = 1.0 + 0.1 * jax.random.normal(ks[2], (C,), jnp.float32)
    be1 = 0.1 * jax.random.normal(ks[3], (C,), jnp.float32)
    m1 = 0.05 * jax.random.normal(ks[4], (C,), jnp.float32)
    v1 = 1.0 + 0.1 * jnp.abs(jax.random.normal(ks[5], (C,), jnp.float32))
    s1 = g1 / jnp.sqrt(v1 + eps)
    b1 = be1 - m1 * s1

    # conv_pw weight (PyTorch shape (Cout, C, 1, 1), bias=False)
    w_pw_oihw = 0.1 * jax.random.normal(ks[6], (Cout, C, 1, 1), jnp.float32)
    w_pw = jnp.transpose(w_pw_oihw[:, :, 0, 0], (1, 0))  # -> (C, Cout)

    # bn2 eval params, folded
    g2 = 1.0 + 0.1 * jax.random.normal(ks[7], (Cout,), jnp.float32)
    be2 = 0.1 * jax.random.normal(ks[8], (Cout,), jnp.float32)
    m2 = 0.05 * jax.random.normal(ks[9], (Cout,), jnp.float32)
    v2 = 1.0 + 0.1 * jnp.abs(jax.random.normal(ks[10], (Cout,), jnp.float32))
    s2 = g2 / jnp.sqrt(v2 + eps)
    b2 = be2 - m2 * s2

    params = (w_dw, s1.reshape(1, C), b1.reshape(1, C),
              w_pw, s2.reshape(1, Cout), b2.reshape(1, Cout))

    # tile_h=4 -> 4 H-strips per image: exercises top/interior/bottom halo paths and
    # the double-buffered prefetch (prime at i==0, prefetch i+1, no cross-batch carry).
    out = depthwise_separable_conv(x, params, dw_kernel_size=K, tile_h=4)
    out = jax.block_until_ready(out)

    ref = _reference(x, w_dw_oihw, s1, b1, w_pw_oihw, s2, b2, K)
    assert out.shape == (N, Cout, H, W)
    # Tolerance accounts for the bf16 MXU pointwise path and (on v6e/v7x) the bf16
    # depthwise/residual path; f32 accumulation is kept for the matmul and output.
    assert jnp.allclose(out, ref, atol=2e-2, rtol=2e-2), "mismatch vs reference"

    print("KERNEL_OK")
</pallas_src>

<mosaic_0001>
module attributes {stable_mosaic.version = 11 : i64} {
  func.func @_ds_conv_kernel(%arg0: i32, %arg1: i32, %arg2: memref<2x16x16x128xf32, #tpu.memory_space<any>>, %arg3: memref<3x3x128xf32, #tpu.memory_space<vmem>>, %arg4: memref<1x128xf32, #tpu.memory_space<vmem>>, %arg5: memref<128x128xbf16, #tpu.memory_space<vmem>>, %arg6: memref<1x128xf32, #tpu.memory_space<vmem>>, %arg7: memref<1x4x16x128xf32, #tpu.memory_space<vmem>>, %arg8: memref<2x6x32x128xf32, #tpu.memory_space<vmem>>, %arg9: memref<2x3x!tpu.dma_semaphore, #tpu.memory_space<semaphore_mem>>) attributes {dimension_semantics = [#tpu.dimension_semantics<parallel>, #tpu.dimension_semantics<arbitrary>], iteration_bounds = array<i64: 2, 4>, scalar_prefetch = 0 : i64, scratch_operands = 2 : i64, tpu.core_type = #tpu.core_type<tc>, window_params = [{}, {pipeline_mode = #tpu.pipeline_mode<synchronous>, transform_indices = @transform_1, window_bounds = array<i64: 3, 3, 128>}, {pipeline_mode = #tpu.pipeline_mode<synchronous>, transform_indices = @transform_2, window_bounds = array<i64: 1, 128>}, {pipeline_mode = #tpu.pipeline_mode<synchronous>, transform_indices = @transform_3, window_bounds = array<i64: 128, 128>}, {pipeline_mode = #tpu.pipeline_mode<synchronous>, transform_indices = @transform_4, window_bounds = array<i64: 1, 128>}, {transform_indices = @transform_5, window_bounds = array<i64: 1, 4, 16, 128>}]} {
    %c2_i32 = arith.constant 2 : i32
    %c0_i32 = arith.constant 0 : i32
    %0 = arith.cmpi eq, %c2_i32, %c0_i32 : i32
    %c1_i32 = arith.constant 1 : i32
    %1 = arith.select %0, %c1_i32, %c2_i32 : i32
    %2 = arith.remsi %arg1, %1 : i32
    %c0_i32_0 = arith.constant 0 : i32
    %3 = arith.cmpi ne, %2, %c0_i32_0 : i32
    %c0_i32_1 = arith.constant 0 : i32
    %4 = arith.cmpi slt, %2, %c0_i32_1 : i32
    %c0_i32_2 = arith.constant 0 : i32
    %5 = arith.cmpi slt, %1, %c0_i32_2 : i32
    %6 = arith.xori %4, %5 : i1
    %7 = arith.andi %6, %3 : i1
    %8 = arith.addi %2, %1 : i32
    %9 = arith.select %7, %8, %2 : i32
    %c0_i32_3 = arith.constant 0 : i32
    %10 = arith.cmpi eq, %arg1, %c0_i32_3 : i32
    %11 = arith.extui %10 : i1 to i32
    %c0_i32_4 = arith.constant 0 : i32
    %12 = arith.cmpi ne, %11, %c0_i32_4 : i32
    scf.if %12 {
      %c1_i32_49 = arith.constant 1 : i32
      %124 = arith.cmpi sle, %arg1, %c1_i32_49 : i32
      %125 = arith.extui %124 : i1 to i32
      %c0_i32_50 = arith.constant 0 : i32
      %126 = arith.cmpi ne, %125, %c0_i32_50 : i32
      scf.if %126 {
        %cst_66 = arith.constant 0.000000e+00 : f32
        %146 = vector.broadcast %cst_66 : f32 to vector<6x8x128xf32>
        %c0_i32_67 = arith.constant 0 : i32
        %c0_i32_68 = arith.constant 0 : i32
        %c0_i32_69 = arith.constant 0 : i32
        %147 = tpu.memref_slice %arg8[%9, %c0_i32_67, %c0_i32_68, %c0_i32_69] : memref<2x6x32x128xf32, #tpu.memory_space<vmem>> -> memref<1x6x32x128xf32, #tpu.memory_space<vmem>>
        %148 = tpu.memref_squeeze %147 : memref<1x6x32x128xf32, #tpu.memory_space<vmem>> -> memref<6x32x128xf32, #tpu.memory_space<vmem>>
        %c0_70 = arith.constant 0 : index
        %c0_71 = arith.constant 0 : index
        %c0_72 = arith.constant 0 : index
        %149 = vector.load %148[%c0_70, %c0_71, %c0_72] : memref<6x32x128xf32, #tpu.memory_space<vmem>>, vector<6x8x128xf32>
        tpu.vector_store %148[%c0_70, %c0_71, %c0_72], %146 {strides = array<i32>} : memref<6x32x128xf32, #tpu.memory_space<vmem>>, vector<6x8x128xf32>,
        %cst_73 = arith.constant 0.000000e+00 : f32
        %150 = vector.broadcast %cst_73 : f32 to vector<6x8x128xf32>
        %c0_i32_74 = arith.constant 0 : i32
        %c0_i32_75 = arith.constant 0 : i32
        %c0_i32_76 = arith.constant 0 : i32
        %151 = tpu.memref_slice %arg8[%9, %c0_i32_74, %c0_i32_75, %c0_i32_76] : memref<2x6x32x128xf32, #tpu.memory_space<vmem>> -> memref<1x6x32x128xf32, #tpu.memory_space<vmem>>
        %152 = tpu.memref_squeeze %151 : memref<1x6x32x128xf32, #tpu.memory_space<vmem>> -> memref<6x32x128xf32, #tpu.memory_space<vmem>>
        %c0_77 = arith.constant 0 : index
        %c24 = arith.constant 24 : index
        %c0_78 = arith.constant 0 : index
        %153 = vector.load %152[%c0_77, %c24, %c0_78] : memref<6x32x128xf32, #tpu.memory_space<vmem>>, vector<6x8x128xf32>
        tpu.vector_store %152[%c0_77, %c24, %c0_78], %150 {strides = array<i32>} : memref<6x32x128xf32, #tpu.memory_space<vmem>>, vector<6x8x128xf32>,
      } else {
      }
      %c0_i32_51 = arith.constant 0 : i32
      %127 = arith.cmpi eq, %arg1, %c0_i32_51 : i32
      %128 = arith.extui %127 : i1 to i32
      %c0_i32_52 = arith.constant 0 : i32
      %129 = arith.cmpi ne, %128, %c0_i32_52 : i32
      scf.if %129 {
        %cst_66 = arith.constant 0.000000e+00 : f32
        %146 = vector.broadcast %cst_66 : f32 to vector<1x32x128xf32>
        %c0_i32_67 = arith.constant 0 : i32
        %c0_i32_68 = arith.constant 0 : i32
        %c0_i32_69 = arith.constant 0 : i32
        %147 = tpu.memref_slice %arg8[%9, %c0_i32_67, %c0_i32_68, %c0_i32_69] : memref<2x6x32x128xf32, #tpu.memory_space<vmem>> -> memref<1x6x32x128xf32, #tpu.memory_space<vmem>>
        %148 = tpu.memref_squeeze %147 : memref<1x6x32x128xf32, #tpu.memory_space<vmem>> -> memref<6x32x128xf32, #tpu.memory_space<vmem>>
        %c0_70 = arith.constant 0 : index
        %c0_71 = arith.constant 0 : index
        %c0_72 = arith.constant 0 : index
        %149 = vector.load %148[%c0_70, %c0_71, %c0_72] : memref<6x32x128xf32, #tpu.memory_space<vmem>>, vector<1x32x128xf32>
        tpu.vector_store %148[%c0_70, %c0_71, %c0_72], %146 {strides = array<i32>} : memref<6x32x128xf32, #tpu.memory_space<vmem>>, vector<1x32x128xf32>,
      } else {
      }
      %c3_i32_53 = arith.constant 3 : i32
      %130 = arith.cmpi eq, %arg1, %c3_i32_53 : i32
      %131 = arith.extui %130 : i1 to i32
      %c0_i32_54 = arith.constant 0 : i32
      %132 = arith.cmpi ne, %131, %c0_i32_54 : i32
      scf.if %132 {
        %cst_66 = arith.constant 0.000000e+00 : f32
        %146 = vector.broadcast %cst_66 : f32 to vector<1x32x128xf32>
        %c0_i32_67 = arith.constant 0 : i32
        %c0_i32_68 = arith.constant 0 : i32
        %c0_i32_69 = arith.constant 0 : i32
        %147 = tpu.memref_slice %arg8[%9, %c0_i32_67, %c0_i32_68, %c0_i32_69] : memref<2x6x32x128xf32, #tpu.memory_space<vmem>> -> memref<1x6x32x128xf32, #tpu.memory_space<vmem>>
        %148 = tpu.memref_squeeze %147 : memref<1x6x32x128xf32, #tpu.memory_space<vmem>> -> memref<6x32x128xf32, #tpu.memory_space<vmem>>
        %c5 = arith.constant 5 : index
        %c0_70 = arith.constant 0 : index
        %c0_71 = arith.constant 0 : index
        %149 = vector.load %148[%c5, %c0_70, %c0_71] : memref<6x32x128xf32, #tpu.memory_space<vmem>>, vector<1x32x128xf32>
        tpu.vector_store %148[%c5, %c0_70, %c0_71], %146 {strides = array<i32>} : memref<6x32x128xf32, #tpu.memory_space<vmem>>, vector<1x32x128xf32>,
      } else {
      }
      %c4_i32_55 = arith.constant 4 : i32
      %133 = arith.muli %arg1, %c4_i32_55 : i32
      %c0_i32_56 = arith.constant 0 : i32
      %c0_i32_57 = arith.constant 0 : i32
      %c0_i32_58 = arith.constant 0 : i32
      %134 = tpu.memref_slice %arg2[%arg0, %133, %c0_i32_57, %c0_i32_58] : memref<2x16x16x128xf32, #tpu.memory_space<any>> -> memref<1x4x16x128xf32, #tpu.memory_space<any>>
      %135 = tpu.memref_squeeze %134 : memref<1x4x16x128xf32, #tpu.memory_space<any>> -> memref<4x16x128xf32, #tpu.memory_space<any>>
      %c1_i32_59 = arith.constant 1 : i32
      %c8_i32_60 = arith.constant 8 : i32
      %c0_i32_61 = arith.constant 0 : i32
      %136 = tpu.memref_slice %arg8[%9, %c1_i32_59, %c8_i32_60, %c0_i32_61] : memref<2x6x32x128xf32, #tpu.memory_space<vmem>> -> memref<1x4x16x128xf32, #tpu.memory_space<vmem>>
      %137 = tpu.memref_squeeze %136 : memref<1x4x16x128xf32, #tpu.memory_space<vmem>> -> memref<4x16x128xf32, #tpu.memory_space<vmem>>
      %138 = tpu.memref_slice %arg9[%9, %c0_i32_56] : memref<2x3x!tpu.dma_semaphore, #tpu.memory_space<semaphore_mem>> -> memref<1x1x!tpu.dma_semaphore, #tpu.memory_space<semaphore_mem>>
      %139 = tpu.memref_squeeze %138 : memref<1x1x!tpu.dma_semaphore, #tpu.memory_space<semaphore_mem>> -> memref<!tpu.dma_semaphore, #tpu.memory_space<semaphore_mem>>
      tpu.enqueue_dma source(%135 : memref<4x16x128xf32, #tpu.memory_space<any>>) target(%137 : memref<4x16x128xf32, #tpu.memory_space<vmem>>) target_semaphore(%139 : memref<!tpu.dma_semaphore, #tpu.memory_space<semaphore_mem>>)
      %c0_i32_62 = arith.constant 0 : i32
      %140 = arith.cmpi sgt, %arg1, %c0_i32_62 : i32
      %141 = arith.extui %140 : i1 to i32
      %c0_i32_63 = arith.constant 0 : i32
      %142 = arith.cmpi ne, %141, %c0_i32_63 : i32
      scf.if %142 {
        %c1_i32_66 = arith.constant 1 : i32
        %146 = arith.subi %133, %c1_i32_66 : i32
        %c1_i32_67 = arith.constant 1 : i32
        %c0_i32_68 = arith.constant 0 : i32
        %c0_i32_69 = arith.constant 0 : i32
        %147 = tpu.memref_slice %arg2[%arg0, %146, %c0_i32_68, %c0_i32_69] : memref<2x16x16x128xf32, #tpu.memory_space<any>> -> memref<1x1x16x128xf32, #tpu.memory_space<any>>
        %148 = tpu.memref_squeeze %147 : memref<1x1x16x128xf32, #tpu.memory_space<any>> -> memref<1x16x128xf32, #tpu.memory_space<any>>
        %c0_i32_70 = arith.constant 0 : i32
        %c8_i32_71 = arith.constant 8 : i32
        %c0_i32_72 = arith.constant 0 : i32
        %149 = tpu.memref_slice %arg8[%9, %c0_i32_70, %c8_i32_71, %c0_i32_72] : memref<2x6x32x128xf32, #tpu.memory_space<vmem>> -> memref<1x1x16x128xf32, #tpu.memory_space<vmem>>
        %150 = tpu.memref_squeeze %149 : memref<1x1x16x128xf32, #tpu.memory_space<vmem>> -> memref<1x16x128xf32, #tpu.memory_space<vmem>>
        %151 = tpu.memref_slice %arg9[%9, %c1_i32_67] : memref<2x3x!tpu.dma_semaphore, #tpu.memory_space<semaphore_mem>> -> memref<1x1x!tpu.dma_semaphore, #tpu.memory_space<semaphore_mem>>
        %152 = tpu.memref_squeeze %151 : memref<1x1x!tpu.dma_semaphore, #tpu.memory_space<semaphore_mem>> -> memref<!tpu.dma_semaphore, #tpu.memory_space<semaphore_mem>>
        tpu.enqueue_dma source(%148 : memref<1x16x128xf32, #tpu.memory_space<any>>) target(%150 : memref<1x16x128xf32, #tpu.memory_space<vmem>>) target_semaphore(%152 : memref<!tpu.dma_semaphore, #tpu.memory_space<semaphore_mem>>)
      } else {
      }
      %c3_i32_64 = arith.constant 3 : i32
      %143 = arith.cmpi slt, %arg1, %c3_i32_64 : i32
      %144 = arith.extui %143 : i1 to i32
      %c0_i32_65 = arith.constant 0 : i32
      %145 = arith.cmpi ne, %144, %c0_i32_65 : i32
      scf.if %145 {
        %c4_i32_66 = arith.constant 4 : i32
        %146 = arith.addi %133, %c4_i32_66 : i32
        %c2_i32_67 = arith.constant 2 : i32
        %c0_i32_68 = arith.constant 0 : i32
        %c0_i32_69 = arith.constant 0 : i32
        %147 = tpu.memref_slice %arg2[%arg0, %146, %c0_i32_68, %c0_i32_69] : memref<2x16x16x128xf32, #tpu.memory_space<any>> -> memref<1x1x16x128xf32, #tpu.memory_space<any>>
        %148 = tpu.memref_squeeze %147 : memref<1x1x16x128xf32, #tpu.memory_space<any>> -> memref<1x16x128xf32, #tpu.memory_space<any>>
        %c5_i32 = arith.constant 5 : i32
        %c8_i32_70 = arith.constant 8 : i32
        %c0_i32_71 = arith.constant 0 : i32
        %149 = tpu.memref_slice %arg8[%9, %c5_i32, %c8_i32_70, %c0_i32_71] : memref<2x6x32x128xf32, #tpu.memory_space<vmem>> -> memref<1x1x16x128xf32, #tpu.memory_space<vmem>>
        %150 = tpu.memref_squeeze %149 : memref<1x1x16x128xf32, #tpu.memory_space<vmem>> -> memref<1x16x128xf32, #tpu.memory_space<vmem>>
        %151 = tpu.memref_slice %arg9[%9, %c2_i32_67] : memref<2x3x!tpu.dma_semaphore, #tpu.memory_space<semaphore_mem>> -> memref<1x1x!tpu.dma_semaphore, #tpu.memory_space<semaphore_mem>>
        %152 = tpu.memref_squeeze %151 : memref<1x1x!tpu.dma_semaphore, #tpu.memory_space<semaphore_mem>> -> memref<!tpu.dma_semaphore, #tpu.memory_space<semaphore_mem>>
        tpu.enqueue_dma source(%148 : memref<1x16x128xf32, #tpu.memory_space<any>>) target(%150 : memref<1x16x128xf32, #tpu.memory_space<vmem>>) target_semaphore(%152 : memref<!tpu.dma_semaphore, #tpu.memory_space<semaphore_mem>>)
      } else {
      }
    } else {
    }
    %c1_i32_5 = arith.constant 1 : i32
    %13 = arith.addi %arg1, %c1_i32_5 : i32
    %c4_i32 = arith.constant 4 : i32
    %14 = arith.cmpi slt, %13, %c4_i32 : i32
    %15 = arith.extui %14 : i1 to i32
    %c0_i32_6 = arith.constant 0 : i32
    %16 = arith.cmpi ne, %15, %c0_i32_6 : i32
    scf.if %16 {
      %c1_i32_49 = arith.constant 1 : i32
      %124 = arith.addi %arg1, %c1_i32_49 : i32
      %c1_i32_50 = arith.constant 1 : i32
      %125 = arith.addi %arg1, %c1_i32_50 : i32
      %c2_i32_51 = arith.constant 2 : i32
      %c0_i32_52 = arith.constant 0 : i32
      %126 = arith.cmpi eq, %c2_i32_51, %c0_i32_52 : i32
      %c1_i32_53 = arith.constant 1 : i32
      %127 = arith.select %126, %c1_i32_53, %c2_i32_51 : i32
      %128 = arith.remsi %125, %127 : i32
      %c0_i32_54 = arith.constant 0 : i32
      %129 = arith.cmpi ne, %128, %c0_i32_54 : i32
      %c0_i32_55 = arith.constant 0 : i32
      %130 = arith.cmpi slt, %128, %c0_i32_55 : i32
      %c0_i32_56 = arith.constant 0 : i32
      %131 = arith.cmpi slt, %127, %c0_i32_56 : i32
      %132 = arith.xori %130, %131 : i1
      %133 = arith.andi %132, %129 : i1
      %134 = arith.addi %128, %127 : i32
      %135 = arith.select %133, %134, %128 : i32
      %c1_i32_57 = arith.constant 1 : i32
      %136 = arith.cmpi sle, %124, %c1_i32_57 : i32
      %137 = arith.extui %136 : i1 to i32
      %c0_i32_58 = arith.constant 0 : i32
      %138 = arith.cmpi ne, %137, %c0_i32_58 : i32
      scf.if %138 {
        %cst_74 = arith.constant 0.000000e+00 : f32
        %158 = vector.broadcast %cst_74 : f32 to vector<6x8x128xf32>
        %c0_i32_75 = arith.constant 0 : i32
        %c0_i32_76 = arith.constant 0 : i32
        %c0_i32_77 = arith.constant 0 : i32
        %159 = tpu.memref_slice %arg8[%135, %c0_i32_75, %c0_i32_76, %c0_i32_77] : memref<2x6x32x128xf32, #tpu.memory_space<vmem>> -> memref<1x6x32x128xf32, #tpu.memory_space<vmem>>
        %160 = tpu.memref_squeeze %159 : memref<1x6x32x128xf32, #tpu.memory_space<vmem>> -> memref<6x32x128xf32, #tpu.memory_space<vmem>>
        %c0_78 = arith.constant 0 : index
        %c0_79 = arith.constant 0 : index
        %c0_80 = arith.constant 0 : index
        %161 = vector.load %160[%c0_78, %c0_79, %c0_80] : memref<6x32x128xf32, #tpu.memory_space<vmem>>, vector<6x8x128xf32>
        tpu.vector_store %160[%c0_78, %c0_79, %c0_80], %158 {strides = array<i32>} : memref<6x32x128xf32, #tpu.memory_space<vmem>>, vector<6x8x128xf32>,
        %cst_81 = arith.constant 0.000000e+00 : f32
        %162 = vector.broadcast %cst_81 : f32 to vector<6x8x128xf32>
        %c0_i32_82 = arith.constant 0 : i32
        %c0_i32_83 = arith.constant 0 : i32
        %c0_i32_84 = arith.constant 0 : i32
        %163 = tpu.memref_slice %arg8[%135, %c0_i32_82, %c0_i32_83, %c0_i32_84] : memref<2x6x32x128xf32, #tpu.memory_space<vmem>> -> memref<1x6x32x128xf32, #tpu.memory_space<vmem>>
        %164 = tpu.memref_squeeze %163 : memref<1x6x32x128xf32, #tpu.memory_space<vmem>> -> memref<6x32x128xf32, #tpu.memory_space<vmem>>
        %c0_85 = arith.constant 0 : index
        %c24 = arith.constant 24 : index
        %c0_86 = arith.constant 0 : index
        %165 = vector.load %164[%c0_85, %c24, %c0_86] : memref<6x32x128xf32, #tpu.memory_space<vmem>>, vector<6x8x128xf32>
        tpu.vector_store %164[%c0_85, %c24, %c0_86], %162 {strides = array<i32>} : memref<6x32x128xf32, #tpu.memory_space<vmem>>, vector<6x8x128xf32>,
      } else {
      }
      %c0_i32_59 = arith.constant 0 : i32
      %139 = arith.cmpi eq, %124, %c0_i32_59 : i32
      %140 = arith.extui %139 : i1 to i32
      %c0_i32_60 = arith.constant 0 : i32
      %141 = arith.cmpi ne, %140, %c0_i32_60 : i32
      scf.if %141 {
        %cst_74 = arith.constant 0.000000e+00 : f32
        %158 = vector.broadcast %cst_74 : f32 to vector<1x32x128xf32>
        %c0_i32_75 = arith.constant 0 : i32
        %c0_i32_76 = arith.constant 0 : i32
        %c0_i32_77 = arith.constant 0 : i32
        %159 = tpu.memref_slice %arg8[%135, %c0_i32_75, %c0_i32_76, %c0_i32_77] : memref<2x6x32x128xf32, #tpu.memory_space<vmem>> -> memref<1x6x32x128xf32, #tpu.memory_space<vmem>>
        %160 = tpu.memref_squeeze %159 : memref<1x6x32x128xf32, #tpu.memory_space<vmem>> -> memref<6x32x128xf32, #tpu.memory_space<vmem>>
        %c0_78 = arith.constant 0 : index
        %c0_79 = arith.constant 0 : index
        %c0_80 = arith.constant 0 : index
        %161 = vector.load %160[%c0_78, %c0_79, %c0_80] : memref<6x32x128xf32, #tpu.memory_space<vmem>>, vector<1x32x128xf32>
        tpu.vector_store %160[%c0_78, %c0_79, %c0_80], %158 {strides = array<i32>} : memref<6x32x128xf32, #tpu.memory_space<vmem>>, vector<1x32x128xf32>,
      } else {
      }
      %c3_i32_61 = arith.constant 3 : i32
      %142 = arith.cmpi eq, %124, %c3_i32_61 : i32
      %143 = arith.extui %142 : i1 to i32
      %c0_i32_62 = arith.constant 0 : i32
      %144 = arith.cmpi ne, %143, %c0_i32_62 : i32
      scf.if %144 {
        %cst_74 = arith.constant 0.000000e+00 : f32
        %158 = vector.broadcast %cst_74 : f32 to vector<1x32x128xf32>
        %c0_i32_75 = arith.constant 0 : i32
        %c0_i32_76 = arith.constant 0 : i32
        %c0_i32_77 = arith.constant 0 : i32
        %159 = tpu.memref_slice %arg8[%135, %c0_i32_75, %c0_i32_76, %c0_i32_77] : memref<2x6x32x128xf32, #tpu.memory_space<vmem>> -> memref<1x6x32x128xf32, #tpu.memory_space<vmem>>
        %160 = tpu.memref_squeeze %159 : memref<1x6x32x128xf32, #tpu.memory_space<vmem>> -> memref<6x32x128xf32, #tpu.memory_space<vmem>>
        %c5 = arith.constant 5 : index
        %c0_78 = arith.constant 0 : index
        %c0_79 = arith.constant 0 : index
        %161 = vector.load %160[%c5, %c0_78, %c0_79] : memref<6x32x128xf32, #tpu.memory_space<vmem>>, vector<1x32x128xf32>
        tpu.vector_store %160[%c5, %c0_78, %c0_79], %158 {strides = array<i32>} : memref<6x32x128xf32, #tpu.memory_space<vmem>>, vector<1x32x128xf32>,
      } else {
      }
      %c4_i32_63 = arith.constant 4 : i32
      %145 = arith.muli %124, %c4_i32_63 : i32
      %c0_i32_64 = arith.constant 0 : i32
      %c0_i32_65 = arith.constant 0 : i32
      %c0_i32_66 = arith.constant 0 : i32
      %146 = tpu.memref_slice %arg2[%arg0, %145, %c0_i32_65, %c0_i32_66] : memref<2x16x16x128xf32, #tpu.memory_space<any>> -> memref<1x4x16x128xf32, #tpu.memory_space<any>>
      %147 = tpu.memref_squeeze %146 : memref<1x4x16x128xf32, #tpu.memory_space<any>> -> memref<4x16x128xf32, #tpu.memory_space<any>>
      %c1_i32_67 = arith.constant 1 : i32
      %c8_i32_68 = arith.constant 8 : i32
      %c0_i32_69 = arith.constant 0 : i32
      %148 = tpu.memref_slice %arg8[%135, %c1_i32_67, %c8_i32_68, %c0_i32_69] : memref<2x6x32x128xf32, #tpu.memory_space<vmem>> -> memref<1x4x16x128xf32, #tpu.memory_space<vmem>>
      %149 = tpu.memref_squeeze %148 : memref<1x4x16x128xf32, #tpu.memory_space<vmem>> -> memref<4x16x128xf32, #tpu.memory_space<vmem>>
      %150 = tpu.memref_slice %arg9[%135, %c0_i32_64] : memref<2x3x!tpu.dma_semaphore, #tpu.memory_space<semaphore_mem>> -> memref<1x1x!tpu.dma_semaphore, #tpu.memory_space<semaphore_mem>>
      %151 = tpu.memref_squeeze %150 : memref<1x1x!tpu.dma_semaphore, #tpu.memory_space<semaphore_mem>> -> memref<!tpu.dma_semaphore, #tpu.memory_space<semaphore_mem>>
      tpu.enqueue_dma source(%147 : memref<4x16x128xf32, #tpu.memory_space<any>>) target(%149 : memref<4x16x128xf32, #tpu.memory_space<vmem>>) target_semaphore(%151 : memref<!tpu.dma_semaphore, #tpu.memory_space<semaphore_mem>>)
      %c0_i32_70 = arith.constant 0 : i32
      %152 = arith.cmpi sgt, %124, %c0_i32_70 : i32
      %153 = arith.extui %152 : i1 to i32
      %c0_i32_71 = arith.constant 0 : i32
      %154 = arith.cmpi ne, %153, %c0_i32_71 : i32
      scf.if %154 {
        %c1_i32_74 = arith.constant 1 : i32
        %158 = arith.subi %145, %c1_i32_74 : i32
        %c1_i32_75 = arith.constant 1 : i32
        %c0_i32_76 = arith.constant 0 : i32
        %c0_i32_77 = arith.constant 0 : i32
        %159 = tpu.memref_slice %arg2[%arg0, %158, %c0_i32_76, %c0_i32_77] : memref<2x16x16x128xf32, #tpu.memory_space<any>> -> memref<1x1x16x128xf32, #tpu.memory_space<any>>
        %160 = tpu.memref_squeeze %159 : memref<1x1x16x128xf32, #tpu.memory_space<any>> -> memref<1x16x128xf32, #tpu.memory_space<any>>
        %c0_i32_78 = arith.constant 0 : i32
        %c8_i32_79 = arith.constant 8 : i32
        %c0_i32_80 = arith.constant 0 : i32
        %161 = tpu.memref_slice %arg8[%135, %c0_i32_78, %c8_i32_79, %c0_i32_80] : memref<2x6x32x128xf32, #tpu.memory_space<vmem>> -> memref<1x1x16x128xf32, #tpu.memory_space<vmem>>
        %162 = tpu.memref_squeeze %161 : memref<1x1x16x128xf32, #tpu.memory_space<vmem>> -> memref<1x16x128xf32, #tpu.memory_space<vmem>>
        %163 = tpu.memref_slice %arg9[%135, %c1_i32_75] : memref<2x3x!tpu.dma_semaphore, #tpu.memory_space<semaphore_mem>> -> memref<1x1x!tpu.dma_semaphore, #tpu.memory_space<semaphore_mem>>
        %164 = tpu.memref_squeeze %163 : memref<1x1x!tpu.dma_semaphore, #tpu.memory_space<semaphore_mem>> -> memref<!tpu.dma_semaphore, #tpu.memory_space<semaphore_mem>>
        tpu.enqueue_dma source(%160 : memref<1x16x128xf32, #tpu.memory_space<any>>) target(%162 : memref<1x16x128xf32, #tpu.memory_space<vmem>>) target_semaphore(%164 : memref<!tpu.dma_semaphore, #tpu.memory_space<semaphore_mem>>)
      } else {
      }
      %c3_i32_72 = arith.constant 3 : i32
      %155 = arith.cmpi slt, %124, %c3_i32_72 : i32
      %156 = arith.extui %155 : i1 to i32
      %c0_i32_73 = arith.constant 0 : i32
      %157 = arith.cmpi ne, %156, %c0_i32_73 : i32
      scf.if %157 {
        %c4_i32_74 = arith.constant 4 : i32
        %158 = arith.addi %145, %c4_i32_74 : i32
        %c2_i32_75 = arith.constant 2 : i32
        %c0_i32_76 = arith.constant 0 : i32
        %c0_i32_77 = arith.constant 0 : i32
        %159 = tpu.memref_slice %arg2[%arg0, %158, %c0_i32_76, %c0_i32_77] : memref<2x16x16x128xf32, #tpu.memory_space<any>> -> memref<1x1x16x128xf32, #tpu.memory_space<any>>
        %160 = tpu.memref_squeeze %159 : memref<1x1x16x128xf32, #tpu.memory_space<any>> -> memref<1x16x128xf32, #tpu.memory_space<any>>
        %c5_i32 = arith.constant 5 : i32
        %c8_i32_78 = arith.constant 8 : i32
        %c0_i32_79 = arith.constant 0 : i32
        %161 = tpu.memref_slice %arg8[%135, %c5_i32, %c8_i32_78, %c0_i32_79] : memref<2x6x32x128xf32, #tpu.memory_space<vmem>> -> memref<1x1x16x128xf32, #tpu.memory_space<vmem>>
        %162 = tpu.memref_squeeze %161 : memref<1x1x16x128xf32, #tpu.memory_space<vmem>> -> memref<1x16x128xf32, #tpu.memory_space<vmem>>
        %163 = tpu.memref_slice %arg9[%135, %c2_i32_75] : memref<2x3x!tpu.dma_semaphore, #tpu.memory_space<semaphore_mem>> -> memref<1x1x!tpu.dma_semaphore, #tpu.memory_space<semaphore_mem>>
        %164 = tpu.memref_squeeze %163 : memref<1x1x!tpu.dma_semaphore, #tpu.memory_space<semaphore_mem>> -> memref<!tpu.dma_semaphore, #tpu.memory_space<semaphore_mem>>
        tpu.enqueue_dma source(%160 : memref<1x16x128xf32, #tpu.memory_space<any>>) target(%162 : memref<1x16x128xf32, #tpu.memory_space<vmem>>) target_semaphore(%164 : memref<!tpu.dma_semaphore, #tpu.memory_space<semaphore_mem>>)
      } else {
      }
    } else {
    }
    %c4_i32_7 = arith.constant 4 : i32
    %17 = arith.muli %arg1, %c4_i32_7 : i32
    %c0_i32_8 = arith.constant 0 : i32
    %c0_i32_9 = arith.constant 0 : i32
    %c0_i32_10 = arith.constant 0 : i32
    %18 = tpu.memref_slice %arg2[%arg0, %17, %c0_i32_9, %c0_i32_10] : memref<2x16x16x128xf32, #tpu.memory_space<any>> -> memref<1x4x16x128xf32, #tpu.memory_space<any>>
    %19 = tpu.memref_squeeze %18 : memref<1x4x16x128xf32, #tpu.memory_space<any>> -> memref<4x16x128xf32, #tpu.memory_space<any>>
    %c1_i32_11 = arith.constant 1 : i32
    %c8_i32 = arith.constant 8 : i32
    %c0_i32_12 = arith.constant 0 : i32
    %20 = tpu.memref_slice %arg8[%9, %c1_i32_11, %c8_i32, %c0_i32_12] : memref<2x6x32x128xf32, #tpu.memory_space<vmem>> -> memref<1x4x16x128xf32, #tpu.memory_space<vmem>>
    %21 = tpu.memref_squeeze %20 : memref<1x4x16x128xf32, #tpu.memory_space<vmem>> -> memref<4x16x128xf32, #tpu.memory_space<vmem>>
    %22 = tpu.memref_slice %arg9[%9, %c0_i32_8] : memref<2x3x!tpu.dma_semaphore, #tpu.memory_space<semaphore_mem>> -> memref<1x1x!tpu.dma_semaphore, #tpu.memory_space<semaphore_mem>>
    %23 = tpu.memref_squeeze %22 : memref<1x1x!tpu.dma_semaphore, #tpu.memory_space<semaphore_mem>> -> memref<!tpu.dma_semaphore, #tpu.memory_space<semaphore_mem>>
    tpu.wait_dma2 semaphore(%23 : memref<!tpu.dma_semaphore, #tpu.memory_space<semaphore_mem>>) src(%19 : memref<4x16x128xf32, #tpu.memory_space<any>>) dst(%21 : memref<4x16x128xf32, #tpu.memory_space<vmem>>)
    %c0_i32_13 = arith.constant 0 : i32
    %24 = arith.cmpi sgt, %arg1, %c0_i32_13 : i32
    %25 = arith.extui %24 : i1 to i32
    %c0_i32_14 = arith.constant 0 : i32
    %26 = arith.cmpi ne, %25, %c0_i32_14 : i32
    scf.if %26 {
      %c1_i32_49 = arith.constant 1 : i32
      %124 = arith.subi %17, %c1_i32_49 : i32
      %c1_i32_50 = arith.constant 1 : i32
      %c0_i32_51 = arith.constant 0 : i32
      %c0_i32_52 = arith.constant 0 : i32
      %125 = tpu.memref_slice %arg2[%arg0, %124, %c0_i32_51, %c0_i32_52] : memref<2x16x16x128xf32, #tpu.memory_space<any>> -> memref<1x1x16x128xf32, #tpu.memory_space<any>>
      %126 = tpu.memref_squeeze %125 : memref<1x1x16x128xf32, #tpu.memory_space<any>> -> memref<1x16x128xf32, #tpu.memory_space<any>>
      %c0_i32_53 = arith.constant 0 : i32
      %c8_i32_54 = arith.constant 8 : i32
      %c0_i32_55 = arith.constant 0 : i32
      %127 = tpu.memref_slice %arg8[%9, %c0_i32_53, %c8_i32_54, %c0_i32_55] : memref<2x6x32x128xf32, #tpu.memory_space<vmem>> -> memref<1x1x16x128xf32, #tpu.memory_space<vmem>>
      %128 = tpu.memref_squeeze %127 : memref<1x1x16x128xf32, #tpu.memory_space<vmem>> -> memref<1x16x128xf32, #tpu.memory_space<vmem>>
      %129 = tpu.memref_slice %arg9[%9, %c1_i32_50] : memref<2x3x!tpu.dma_semaphore, #tpu.memory_space<semaphore_mem>> -> memref<1x1x!tpu.dma_semaphore, #tpu.memory_space<semaphore_mem>>
      %130 = tpu.memref_squeeze %129 : memref<1x1x!tpu.dma_semaphore, #tpu.memory_space<semaphore_mem>> -> memref<!tpu.dma_semaphore, #tpu.memory_space<semaphore_mem>>
      tpu.wait_dma2 semaphore(%130 : memref<!tpu.dma_semaphore, #tpu.memory_space<semaphore_mem>>) src(%126 : memref<1x16x128xf32, #tpu.memory_space<any>>) dst(%128 : memref<1x16x128xf32, #tpu.memory_space<vmem>>)
    } else {
    }
    %c3_i32 = arith.constant 3 : i32
    %27 = arith.cmpi slt, %arg1, %c3_i32 : i32
    %28 = arith.extui %27 : i1 to i32
    %c0_i32_15 = arith.constant 0 : i32
    %29 = arith.cmpi ne, %28, %c0_i32_15 : i32
    scf.if %29 {
      %c4_i32_49 = arith.constant 4 : i32
      %124 = arith.addi %17, %c4_i32_49 : i32
      %c2_i32_50 = arith.constant 2 : i32
      %c0_i32_51 = arith.constant 0 : i32
      %c0_i32_52 = arith.constant 0 : i32
      %125 = tpu.memref_slice %arg2[%arg0, %124, %c0_i32_51, %c0_i32_52] : memref<2x16x16x128xf32, #tpu.memory_space<any>> -> memref<1x1x16x128xf32, #tpu.memory_space<any>>
      %126 = tpu.memref_squeeze %125 : memref<1x1x16x128xf32, #tpu.memory_space<any>> -> memref<1x16x128xf32, #tpu.memory_space<any>>
      %c5_i32 = arith.constant 5 : i32
      %c8_i32_53 = arith.constant 8 : i32
      %c0_i32_54 = arith.constant 0 : i32
      %127 = tpu.memref_slice %arg8[%9, %c5_i32, %c8_i32_53, %c0_i32_54] : memref<2x6x32x128xf32, #tpu.memory_space<vmem>> -> memref<1x1x16x128xf32, #tpu.memory_space<vmem>>
      %128 = tpu.memref_squeeze %127 : memref<1x1x16x128xf32, #tpu.memory_space<vmem>> -> memref<1x16x128xf32, #tpu.memory_space<vmem>>
      %129 = tpu.memref_slice %arg9[%9, %c2_i32_50] : memref<2x3x!tpu.dma_semaphore, #tpu.memory_space<semaphore_mem>> -> memref<1x1x!tpu.dma_semaphore, #tpu.memory_space<semaphore_mem>>
      %130 = tpu.memref_squeeze %129 : memref<1x1x!tpu.dma_semaphore, #tpu.memory_space<semaphore_mem>> -> memref<!tpu.dma_semaphore, #tpu.memory_space<semaphore_mem>>
      tpu.wait_dma2 semaphore(%130 : memref<!tpu.dma_semaphore, #tpu.memory_space<semaphore_mem>>) src(%126 : memref<1x16x128xf32, #tpu.memory_space<any>>) dst(%128 : memref<1x16x128xf32, #tpu.memory_space<vmem>>)
    } else {
    }
    %c0 = arith.constant 0 : index
    %c0_16 = arith.constant 0 : index
    %c0_17 = arith.constant 0 : index
    %30 = vector.load %arg3[%c0, %c0_16, %c0_17] : memref<3x3x128xf32, #tpu.memory_space<vmem>>, vector<3x3x128xf32>
    %c0_i32_18 = arith.constant 0 : i32
    %c0_i32_19 = arith.constant 0 : i32
    %c0_i32_20 = arith.constant 0 : i32
    %31 = tpu.memref_slice %arg8[%9, %c0_i32_18, %c0_i32_19, %c0_i32_20] : memref<2x6x32x128xf32, #tpu.memory_space<vmem>> -> memref<1x6x32x128xf32, #tpu.memory_space<vmem>>
    %32 = tpu.memref_squeeze %31 : memref<1x6x32x128xf32, #tpu.memory_space<vmem>> -> memref<6x32x128xf32, #tpu.memory_space<vmem>>
    %c0_21 = arith.constant 0 : index
    %c7 = arith.constant 7 : index
    %c0_22 = arith.constant 0 : index
    %33 = vector.load %32[%c0_21, %c7, %c0_22] : memref<6x32x128xf32, #tpu.memory_space<vmem>>, vector<6x16x128xf32>
    %34 = vector.extract_strided_slice %33 {offsets = [0, 0, 0], sizes = [4, 16, 128], strides = [1, 1, 1]} : vector<6x16x128xf32> to vector<4x16x128xf32>
    %35 = vector.extract_strided_slice %30 {offsets = [0, 0, 0], sizes = [1, 1, 128], strides = [1, 1, 1]} : vector<3x3x128xf32> to vector<1x1x128xf32>
    %36 = vector.shape_cast %35 : vector<1x1x128xf32> to vector<128xf32>
    %37 = vector.shape_cast %36 : vector<128xf32> to vector<1x1x128xf32>
    %38 = vector.broadcast %37 : vector<1x1x128xf32> to vector<4x16x128xf32>
    %39 = arith.mulf %34, %38 : vector<4x16x128xf32>
    %40 = vector.extract_strided_slice %33 {offsets = [1, 0, 0], sizes = [4, 16, 128], strides = [1, 1, 1]} : vector<6x16x128xf32> to vector<4x16x128xf32>
    %41 = vector.extract_strided_slice %30 {offsets = [1, 0, 0], sizes = [1, 1, 128], strides = [1, 1, 1]} : vector<3x3x128xf32> to vector<1x1x128xf32>
    %42 = vector.shape_cast %41 : vector<1x1x128xf32> to vector<128xf32>
    %43 = vector.shape_cast %42 : vector<128xf32> to vector<1x1x128xf32>
    %44 = vector.broadcast %43 : vector<1x1x128xf32> to vector<4x16x128xf32>
    %45 = arith.mulf %40, %44 : vector<4x16x128xf32>
    %46 = arith.addf %39, %45 : vector<4x16x128xf32>
    %47 = vector.extract_strided_slice %33 {offsets = [2, 0, 0], sizes = [4, 16, 128], strides = [1, 1, 1]} : vector<6x16x128xf32> to vector<4x16x128xf32>
    %48 = vector.extract_strided_slice %30 {offsets = [2, 0, 0], sizes = [1, 1, 128], strides = [1, 1, 1]} : vector<3x3x128xf32> to vector<1x1x128xf32>
    %49 = vector.shape_cast %48 : vector<1x1x128xf32> to vector<128xf32>
    %50 = vector.shape_cast %49 : vector<128xf32> to vector<1x1x128xf32>
    %51 = vector.broadcast %50 : vector<1x1x128xf32> to vector<4x16x128xf32>
    %52 = arith.mulf %47, %51 : vector<4x16x128xf32>
    %53 = arith.addf %46, %52 : vector<4x16x128xf32>
    %c0_i32_23 = arith.constant 0 : i32
    %c0_i32_24 = arith.constant 0 : i32
    %c0_i32_25 = arith.constant 0 : i32
    %54 = tpu.memref_slice %arg8[%9, %c0_i32_23, %c0_i32_24, %c0_i32_25] : memref<2x6x32x128xf32, #tpu.memory_space<vmem>> -> memref<1x6x32x128xf32, #tpu.memory_space<vmem>>
    %55 = tpu.memref_squeeze %54 : memref<1x6x32x128xf32, #tpu.memory_space<vmem>> -> memref<6x32x128xf32, #tpu.memory_space<vmem>>
    %c0_26 = arith.constant 0 : index
    %c8 = arith.constant 8 : index
    %c0_27 = arith.constant 0 : index
    %56 = vector.load %55[%c0_26, %c8, %c0_27] : memref<6x32x128xf32, #tpu.memory_space<vmem>>, vector<6x16x128xf32>
    %57 = vector.extract_strided_slice %56 {offsets = [0, 0, 0], sizes = [4, 16, 128], strides = [1, 1, 1]} : vector<6x16x128xf32> to vector<4x16x128xf32>
    %58 = vector.extract_strided_slice %30 {offsets = [0, 1, 0], sizes = [1, 1, 128], strides = [1, 1, 1]} : vector<3x3x128xf32> to vector<1x1x128xf32>
    %59 = vector.shape_cast %58 : vector<1x1x128xf32> to vector<128xf32>
    %60 = vector.shape_cast %59 : vector<128xf32> to vector<1x1x128xf32>
    %61 = vector.broadcast %60 : vector<1x1x128xf32> to vector<4x16x128xf32>
    %62 = arith.mulf %57, %61 : vector<4x16x128xf32>
    %63 = arith.addf %53, %62 : vector<4x16x128xf32>
    %64 = vector.extract_strided_slice %56 {offsets = [1, 0, 0], sizes = [4, 16, 128], strides = [1, 1, 1]} : vector<6x16x128xf32> to vector<4x16x128xf32>
    %65 = vector.extract_strided_slice %30 {offsets = [1, 1, 0], sizes = [1, 1, 128], strides = [1, 1, 1]} : vector<3x3x128xf32> to vector<1x1x128xf32>
    %66 = vector.shape_cast %65 : vector<1x1x128xf32> to vector<128xf32>
    %67 = vector.shape_cast %66 : vector<128xf32> to vector<1x1x128xf32>
    %68 = vector.broadcast %67 : vector<1x1x128xf32> to vector<4x16x128xf32>
    %69 = arith.mulf %64, %68 : vector<4x16x128xf32>
    %70 = arith.addf %63, %69 : vector<4x16x128xf32>
    %71 = vector.extract_strided_slice %56 {offsets = [2, 0, 0], sizes = [4, 16, 128], strides = [1, 1, 1]} : vector<6x16x128xf32> to vector<4x16x128xf32>
    %72 = vector.extract_strided_slice %30 {offsets = [2, 1, 0], sizes = [1, 1, 128], strides = [1, 1, 1]} : vector<3x3x128xf32> to vector<1x1x128xf32>
    %73 = vector.shape_cast %72 : vector<1x1x128xf32> to vector<128xf32>
    %74 = vector.shape_cast %73 : vector<128xf32> to vector<1x1x128xf32>
    %75 = vector.broadcast %74 : vector<1x1x128xf32> to vector<4x16x128xf32>
    %76 = arith.mulf %71, %75 : vector<4x16x128xf32>
    %77 = arith.addf %70, %76 : vector<4x16x128xf32>
    %c0_i32_28 = arith.constant 0 : i32
    %c0_i32_29 = arith.constant 0 : i32
    %c0_i32_30 = arith.constant 0 : i32
    %78 = tpu.memref_slice %arg8[%9, %c0_i32_28, %c0_i32_29, %c0_i32_30] : memref<2x6x32x128xf32, #tpu.memory_space<vmem>> -> memref<1x6x32x128xf32, #tpu.memory_space<vmem>>
    %79 = tpu.memref_squeeze %78 : memref<1x6x32x128xf32, #tpu.memory_space<vmem>> -> memref<6x32x128xf32, #tpu.memory_space<vmem>>
    %c0_31 = arith.constant 0 : index
    %c9 = arith.constant 9 : index
    %c0_32 = arith.constant 0 : index
    %80 = vector.load %79[%c0_31, %c9, %c0_32] : memref<6x32x128xf32, #tpu.memory_space<vmem>>, vector<6x16x128xf32>
    %81 = vector.extract_strided_slice %80 {offsets = [0, 0, 0], sizes = [4, 16, 128], strides = [1, 1, 1]} : vector<6x16x128xf32> to vector<4x16x128xf32>
    %82 = vector.extract_strided_slice %30 {offsets = [0, 2, 0], sizes = [1, 1, 128], strides = [1, 1, 1]} : vector<3x3x128xf32> to vector<1x1x128xf32>
    %83 = vector.shape_cast %82 : vector<1x1x128xf32> to vector<128xf32>
    %84 = vector.shape_cast %83 : vector<128xf32> to vector<1x1x128xf32>
    %85 = vector.broadcast %84 : vector<1x1x128xf32> to vector<4x16x128xf32>
    %86 = arith.mulf %81, %85 : vector<4x16x128xf32>
    %87 = arith.addf %77, %86 : vector<4x16x128xf32>
    %88 = vector.extract_strided_slice %80 {offsets = [1, 0, 0], sizes = [4, 16, 128], strides = [1, 1, 1]} : vector<6x16x128xf32> to vector<4x16x128xf32>
    %89 = vector.extract_strided_slice %30 {offsets = [1, 2, 0], sizes = [1, 1, 128], strides = [1, 1, 1]} : vector<3x3x128xf32> to vector<1x1x128xf32>
    %90 = vector.shape_cast %89 : vector<1x1x128xf32> to vector<128xf32>
    %91 = vector.shape_cast %90 : vector<128xf32> to vector<1x1x128xf32>
    %92 = vector.broadcast %91 : vector<1x1x128xf32> to vector<4x16x128xf32>
    %93 = arith.mulf %88, %92 : vector<4x16x128xf32>
    %94 = arith.addf %87, %93 : vector<4x16x128xf32>
    %95 = vector.extract_strided_slice %80 {offsets = [2, 0, 0], sizes = [4, 16, 128], strides = [1, 1, 1]} : vector<6x16x128xf32> to vector<4x16x128xf32>
    %96 = vector.extract_strided_slice %30 {offsets = [2, 2, 0], sizes = [1, 1, 128], strides = [1, 1, 1]} : vector<3x3x128xf32> to vector<1x1x128xf32>
    %97 = vector.shape_cast %96 : vector<1x1x128xf32> to vector<128xf32>
    %98 = vector.shape_cast %97 : vector<128xf32> to vector<1x1x128xf32>
    %99 = vector.broadcast %98 : vector<1x1x128xf32> to vector<4x16x128xf32>
    %100 = arith.mulf %95, %99 : vector<4x16x128xf32>
    %101 = arith.addf %94, %100 : vector<4x16x128xf32>
    %c0_33 = arith.constant 0 : index
    %c0_34 = arith.constant 0 : index
    %102 = vector.load %arg4[%c0_33, %c0_34] : memref<1x128xf32, #tpu.memory_space<vmem>>, vector<1x128xf32>
    %103 = vector.shape_cast %102 : vector<1x128xf32> to vector<1x1x128xf32>
    %104 = vector.broadcast %103 : vector<1x1x128xf32> to vector<4x16x128xf32>
    %105 = arith.addf %101, %104 : vector<4x16x128xf32>
    %cst = arith.constant 0.000000e+00 : f32
    %106 = vector.broadcast %cst : f32 to vector<4x16x128xf32>
    %107 = arith.maximumf %105, %106 : vector<4x16x128xf32>
    %108 = vector.shape_cast %107 : vector<4x16x128xf32> to vector<64x128xf32>
    %109 = arith.truncf %108 : vector<64x128xf32> to vector<64x128xbf16>
    %c0_35 = arith.constant 0 : index
    %c0_36 = arith.constant 0 : index
    %110 = vector.load %arg5[%c0_35, %c0_36] : memref<128x128xbf16, #tpu.memory_space<vmem>>, vector<128x128xbf16>
    %cst_37 = arith.constant dense<0.000000e+00> : vector<64x128xf32>
    %111 = tpu.matmul %109, %110, %cst_37 {dimension_numbers = #tpu.dot_dimension_numbers<[1], [0], [0], [1], [0, 0, 1, 1], [], []>} : vector<64x128xbf16>, vector<128x128xbf16>, vector<64x128xf32> -> vector<64x128xf32>
    %112 = vector.shape_cast %111 : vector<64x128xf32> to vector<4x16x128xf32>
    %c0_38 = arith.constant 0 : index
    %c0_39 = arith.constant 0 : index
    %113 = vector.load %arg6[%c0_38, %c0_39] : memref<1x128xf32, #tpu.memory_space<vmem>>, vector<1x128xf32>
    %114 = vector.shape_cast %113 : vector<1x128xf32> to vector<1x1x128xf32>
    %115 = vector.broadcast %114 : vector<1x1x128xf32> to vector<4x16x128xf32>
    %116 = arith.addf %112, %115 : vector<4x16x128xf32>
    %c0_i32_40 = arith.constant 0 : i32
    %c0_i32_41 = arith.constant 0 : i32
    %c0_i32_42 = arith.constant 0 : i32
    %117 = tpu.memref_slice %arg8[%9, %c0_i32_40, %c0_i32_41, %c0_i32_42] : memref<2x6x32x128xf32, #tpu.memory_space<vmem>> -> memref<1x6x32x128xf32, #tpu.memory_space<vmem>>
    %118 = tpu.memref_squeeze %117 : memref<1x6x32x128xf32, #tpu.memory_space<vmem>> -> memref<6x32x128xf32, #tpu.memory_space<vmem>>
    %c1 = arith.constant 1 : index
    %c8_43 = arith.constant 8 : index
    %c0_44 = arith.constant 0 : index
    %119 = vector.load %118[%c1, %c8_43, %c0_44] : memref<6x32x128xf32, #tpu.memory_space<vmem>>, vector<4x16x128xf32>
    %120 = arith.addf %116, %119 : vector<4x16x128xf32>
    %c0_45 = arith.constant 0 : index
    %c0_46 = arith.constant 0 : index
    %c0_47 = arith.constant 0 : index
    %c0_48 = arith.constant 0 : index
    %121 = vector.load %arg7[%c0_45, %c0_46, %c0_47, %c0_48] : memref<1x4x16x128xf32, #tpu.memory_space<vmem>>, vector<1x4x16x128xf32>
    %122 = vector.shape_cast %121 : vector<1x4x16x128xf32> to vector<4x16x128xf32>
    %123 = vector.shape_cast %120 : vector<4x16x128xf32> to vector<1x4x16x128xf32>
    tpu.vector_store %arg7[%c0_45, %c0_46, %c0_47, %c0_48], %123 {strides = array<i32>} : memref<1x4x16x128xf32, #tpu.memory_space<vmem>>, vector<1x4x16x128xf32>,
    return
  }
  func.func @transform_1(%arg0: i32, %arg1: i32) -> (i32, i32, i32) {
    %c0_i32 = arith.constant 0 : i32
    %c0_i32_0 = arith.constant 0 : i32
    %c0_i32_1 = arith.constant 0 : i32
    %c0_i32_2 = arith.constant 0 : i32
    return %c0_i32, %c0_i32_0, %c0_i32_1 : i32, i32, i32
  }
  func.func @transform_2(%arg0: i32, %arg1: i32) -> (i32, i32) {
    %c0_i32 = arith.constant 0 : i32
    %c0_i32_0 = arith.constant 0 : i32
    %c0_i32_1 = arith.constant 0 : i32
    return %c0_i32, %c0_i32_0 : i32, i32
  }
  func.func @transform_3(%arg0: i32, %arg1: i32) -> (i32, i32) {
    %c0_i32 = arith.constant 0 : i32
    %c0_i32_0 = arith.constant 0 : i32
    %c0_i32_1 = arith.constant 0 : i32
    return %c0_i32, %c0_i32_0 : i32, i32
  }
  func.func @transform_4(%arg0: i32, %arg1: i32) -> (i32, i32) {
    %c0_i32 = arith.constant 0 : i32
    %c0_i32_0 = arith.constant 0 : i32
    %c0_i32_1 = arith.constant 0 : i32
    return %c0_i32, %c0_i32_0 : i32, i32
  }
  func.func @transform_5(%arg0: i32, %arg1: i32) -> (i32, i32, i32, i32) {
    %c0_i32 = arith.constant 0 : i32
    %c0_i32_0 = arith.constant 0 : i32
    %c0_i32_1 = arith.constant 0 : i32
    return %arg0, %arg1, %c0_i32, %c0_i32_0 : i32, i32, i32, i32
  }
}

</mosaic_0001>

<bundles_post_ra>
// kernel: tpu_custom_call.1
= control target key start
LH: loop header
LB: loop body
LE: loop exit
PB: predicated region body
PF: predicated region fallthrough
CT: control target
= control target key end

     0   :  { %s2441_s0 = inlined_call_operand.hbm [shape: f32[2,16,16,128], index: 0, kind: input, shape index: {}]   ;;  %s2442_s1 = inlined_call_operand.hbm [shape: f32[3,3,128], index: 1, kind: input, shape index: {}]   ;;  %s2443_s2 = inlined_call_operand.vmem [shape: f32[1,128], index: 2, kind: input, shape index: {}]   ;;  %s2444_s3 = inlined_call_operand.hbm [shape: bf16[128,128], index: 3, kind: input, shape index: {}]   ;;  %s2445_s4 = inlined_call_operand.vmem [shape: f32[1,128], index: 4, kind: input, shape index: {}]   ;;  %s2446_s5 = inlined_call_operand.hbm [shape: f32[2,16,16,128], index: 5, kind: output, shape index: {}]  }
   0x1   :  { %2463 = sst [smem:[#allocation40_spill]] %s2442_s1 }
   0x2   :  { %2464 = sst [smem:[#allocation41_spill]] %s2443_s2 }
   0x3   :  { %2465 = sst [smem:[#allocation42_spill]] %s2444_s3 }
   0x4   :  { %2466 = sst [smem:[#allocation43_spill]] %s2445_s4 }
   0x5   :  { %2467 = sst [smem:[#allocation44_spill]] %s2446_s5 }
   0x6   :  { %10 = vsyncpa [#allocation5], 0 }
   0x7   :  { %11 = vsyncpa [#allocation8], 0 }
   0x8   :  { %12 = vsyncpa [#allocation6], 0 }
   0x9   :  { %14 = vsyncpa [#allocation6 + $0x1], 0  ;;  %s1771_s18 = smov 0   ;;  %s1773_s19 = smov 0  }
   0xa   :  { %s1775_s20 = smov 0   ;;  %s1777_s21 = smov 0  }
   0xb   :  { %s1779_s22 = smov 0   ;;  %s1781_s23 = smov 0  }
   0xc   :  { %s1783_s24 = smov 0   ;;  %s1785_s25 = smov 0  }
   0xd LB: > { %2468 = sst [smem:[#allocation28_spill]] %s1690_s18  ;;  %s1123_s26 = sadd.s32 4294967295, %s1718_s25   ;;  %s1718_s25 = sphi %s1785_s25, %s20_s25   ;;  %s1714_s24 = sphi %s1783_s24, %s2505_s24   ;;  %s1710_s23 = sphi %s1781_s23, %s2504_s23   ;;  %s1706_s22 = sphi %s1779_s22, %s2503_s22   ;;  %s1702_s21 = sphi %s1777_s21, %s2502_s21   ;;  %s1698_s20 = sphi %s1775_s20, %s2501_s20   ;;  %s1694_s19 = sphi %s1773_s19, %s2500_s19   ;;  %s1690_s18 = sphi %s1771_s18, %s2499_s18  }
   0xe   : > { %2469 = sst [smem:[#allocation29_spill]] %s1694_s19  ;;  %s1124_s27 = sadd.s32 4294967294, %s1718_s25  }
   0xf   : > { %2470 = sst [smem:[#allocation30_spill]] %s1698_s20  ;;  %s29_s28 = sadd.s32 1, %s1710_s23 }
  0x10   : > { %2471 = sst [smem:[#allocation31_spill]] %s1710_s23  ;;  %s32_s29 = sadd.s32 1, %s1714_s24 }
  0x11   : > { %2472 = sst [smem:[#allocation32_spill]] %s1714_s24  ;;  %p30_p0 = scmp.ge.s32.totalorder %s29_s28, 4 }
  0x12   : > { %2473 = sst [smem:[#allocation33_spill]] %s1718_s25  ;;  %s125_s30 = sadd.s32 1, %s1698_s20 }
  0x13   : > { %p135_p1 = scmp.ne.s32.totalorder %s1698_s20, %s1694_s19  ;;  %p136_p2 = scmp.eq.s32.totalorder %s1123_s26, 7 }
  0x14   : > { %s2507_s28 = smov (%p30_p0, %s29_s28), 0  ;;  %s2509_s29 = smov (!%p30_p0, %s32_s29), %s1714_s24 }
  0x15   : > { %2474 = sst [smem:[#allocation34_spill]] %s2507_s28  ;;  %s121_s6 = ssub.s32 %s1710_s23, %s2507_s28 }
  0x16   : > { %p1823_p3 = por %p136_p2, %p135_p1  ;;  %p34_p4 = scmp.ge.s32.totalorder %s2509_s29, 2 }
  0x17   : > { %p141_p5 = scmp.ne.s32.totalorder %s1694_s19, %s1690_s18  ;;  %p142_p6 = scmp.eq.s32.totalorder %s1124_s27, 7 }
  0x18   : > { %s2475_s7 = scalar_select %p1823_p3, 1, 0 }
  0x19   : > { %p1125_p7 = scmp.ge.s32.totalorder %s1718_s25, 1  ;;  %s2511_s29 = smov (%p34_p4, %s2509_s29), 0 }
  0x1a   : > { %2476 = sst [smem:[#allocation35_spill]] %s2475_s7  ;;  %p1832_p8 = por %p142_p6, %p141_p5 }
  0x1b   : > { %2477 = sst [smem:[#allocation36_spill]] %s2511_s29  ;;  %p149_p9 = scmp.lt.s32.totalorder %s1718_s25, 9 }
  0x1c   : > { %s2478_s8 = scalar_select %p1832_p8, 1, 0 }
  0x1d   : > { %s120_s9 = ssub.s32 %s1714_s24, %s2511_s29  ;;  %p1839_p10 = pnand %p1125_p7, %p149_p9 }
  0x1e   : > { %2479 = sst [smem:[#allocation37_spill]] %s2478_s8  ;;  %s122_s10 = sor.u32 %s121_s6, %s120_s9 }
  0x1f   : > { %p123_p11 = scmp.eq.s32.totalorder %s122_s10, 0  ;;  %p1843_p12 = scmp.eq.s32.totalorder %s1123_s26, 0 }
  0x20   : > { %p1293_p13 = pneg %p1839_p10  ;;  %s1720_s14 = smov [#allocation4]  }
  0x21   : > { %s1850_s13 = scalar_select %p123_p11, %s1698_s20, %s125_s30  }
  0x22   : > { %s161_s15 = sshll.u32 %s1720_s14, 4  ;;  %p1854_p0 = pnand %p1843_p12, %p1293_p13  ;;  %s162_s15 = int_to_ptr.vmem [resolvable:$true] %s161_s15 }
  0x23   : > { %2482 = sst [smem:[#allocation38_spill]] %s1850_s13  ;;  %s1416_s17 = scalar_lea.vmem %s162_s15, 192 }
  0x24   : > { %p1407_p1 = pneg %p1854_p0  ;;  %p1417_p2 = scmp.ne.s32.totalorder %s162_s15, %s1416_s17 }
  0x25   : > { %p1424_p6 = scmp.lt.s32.totalorder %s162_s15, %s162_s15  ;;  %p1425_p7 = scmp.lt.s32.totalorder %s1416_s17, %s1416_s17 }
  0x26   : > { %p1419_p4 = pnand %p1417_p2, %p1407_p1 }
  0x27   : > { %p1426_p9 = por %p1425_p7, %p1424_p6 }
  0x28   : > { %p1420_p5 = pneg %p1419_p4 }
  0x2a   : > { %p1427_p11 = pnand %p1426_p9, %p1420_p5 }
  0x2c   : > { %1430 = shalt.err (!%p1427_p11)
}
  0x2d   : > { %s1721_s26 = smov 64   ;;  %s1722_s27 = smov 4  }
  0x2e   : > { %s2484_s1 = sld [smem:[#allocation40_spill]]  ;;  %s1723_s9 = smov [#allocation7]  }
  0x2f   : > { %s177_s10 = sshll.u32 %s1723_s9, 4  ;;  %s178_s10 = int_to_ptr.vmem [resolvable:$true] %s177_s10 }
  0x30   : > { %s1442_s14 = scalar_lea.vmem %s178_s10, 1024  ;;  %p1450_p5 = scmp.lt.s32.totalorder %s178_s10, %s178_s10 }
  0x31   : > { %p1443_p13 = scmp.ne.s32.totalorder %s178_s10, %s1442_s14  ;;  %p1451_p6 = scmp.lt.s32.totalorder %s1442_s14, %s1442_s14 }
  0x33   : > { %p1445_p2 = pnand %p1443_p13, %p1407_p1  ;;  %p1452_p7 = por %p1451_p6, %p1450_p5 }
  0x34   : > { %1296 = dma.hbm_to_vmem [thread:$0]  (!%p1854_p0), %s2484_s1, 192, %s162_s15, [#allocation5], %s1721_s26, %s1721_s26, %s1722_s27  }
  0x35   : > { %p1446_p4 = pneg %p1445_p2 }
  0x37   : > { %p1453_p9 = pnand %p1452_p7, %p1446_p4 }
  0x39   : > { %1456 = shalt.err (!%p1453_p9)
}
  0x3a   : > { %s2485_s3 = sld [smem:[#allocation42_spill]] }
  0x3c   : > { %196 = sbr.rel (%p1839_p10) target bundleno = 584 (0x248), region = 36 }
  0x40   : > { %1299 = dma.hbm_to_vmem [thread:$0]  (!%p1854_p0), %s2485_s3, 1024, %s178_s10, [#allocation8], %s1721_s26, %s1721_s26, %s1722_s27  }
  0x41   : > { %1667 = dma.done.wait (%p1843_p12), [#allocation5], 192  }
  0x42   : > { %1669 = vsyncadd (%p1843_p12), [#allocation5], 4294967104 }
  0x43   : > { %1671 = dma.done.wait (%p1843_p12), [#allocation8], 1024  }
  0x44   : > { %1673 = vsyncadd (%p1843_p12), [#allocation8], 4294966272  ;;  %s2448_s29 = sand.u32 1, %s1694_s19   ;;  %p223_p0 = scmp.lt.s32.totalorder %s1702_s21, 0 }
  0x45   : > { %s1131_s11 = sshll.u32 %s2448_s29, 6  ;;  %s224_s15 = ssub.s32 0, %s1702_s21 }
  0x46   : > { %s1132_s16 = smin.u32 %s1702_s21, %s224_s15  ;;  %s1894_s12 = scalar_lea.vmem [#allocation9], %s1131_s11 }
  0x47   : > { %s226_s26 = sand.u32 1, %s1132_s16   ;;  %2486 = sst [smem:[#allocation39_spill]] %s1894_s12 }
  0x48   : > { %s227_s27 = ssub.s32 0, %s226_s26  ;;  %p1135_p12 = scmp.ne.s32.totalorder %s1702_s21, 0 }
  0x49   : > { %s2513_s27 = smov (!%p223_p0, %s227_s27), %s226_s26  ;;  %p1136_p1 = scmp.gt.s32.totalorder (!%p1135_p12), %s1702_s21, 1 }
  0x4a   : > { %p1134_p10 = scmp.lt.s32.totalorder %s2513_s27, 0  ;;  %s233_s30 = sadd.s32 2, %s2513_s27 }
  0x4b   : > { %238 = sbr.rel (%p1135_p12) target bundleno = 179 (0xb3), region = 48 }
  0x4c   : > { %s2515_s30 = smov (!%p1134_p10, %s233_s30), %s2513_s27 }
  0x50   : > { %242 = sbr.rel (%p1136_p1) target bundleno = 92 (0x5c), region = 52 }
  0x51   : > { %s243_s6 = smul.u32 (!%p1136_p1), 192, %s2515_s30 }
  0x53   : > { %s244_s9 = scalar_lea.vmem (!%p1136_p1), [#allocation2], %s243_s6 }
  0x55   : > { %v1724_v0 = vmov 0.0  }
  0x56   : > { %245 = vst [vmem:[%s244_s9] sm:$0xff] %v1724_v0  ;;  %246 = vst [vmem:[%s244_s9 + $0x20] sm:$0xff] %v1724_v0 }
  0x57   : > { %247 = vst [vmem:[%s244_s9 + $0x40] sm:$0xff] %v1724_v0  ;;  %248 = vst [vmem:[%s244_s9 + $0x60] sm:$0xff] %v1724_v0 }
  0x58   : > { %249 = vst [vmem:[%s244_s9 + $0x80] sm:$0xff] %v1724_v0  ;;  %250 = vst [vmem:[%s244_s9 + $0xa0] sm:$0xff] %v1724_v0 }
  0x59   : > { %251 = vst [vmem:[%s244_s9 + $0x18] sm:$0xff] %v1724_v0  ;;  %252 = vst [vmem:[%s244_s9 + $0x38] sm:$0xff] %v1724_v0 }
  0x5a   : > { %253 = vst [vmem:[%s244_s9 + $0x58] sm:$0xff] %v1724_v0  ;;  %254 = vst [vmem:[%s244_s9 + $0x78] sm:$0xff] %v1724_v0 }
  0x5b   : > { %255 = vst [vmem:[%s244_s9 + $0x98] sm:$0xff] %v1724_v0  ;;  %256 = vst [vmem:[%s244_s9 + $0xb8] sm:$0xff] %v1724_v0 }
  0x5c PF: > { %s257_s10 = smul.u32 192, %s2515_s30  ;;  %v1725_v1 = vmov 0.0   ;;  %p1137_p11 = scmp.ne.s32.totalorder %s1702_s21, 3 }
  0x5e   : > { %s1900_s14 = scalar_lea.vmem [#allocation2], %s257_s10  ;;  %266 = sbr.rel (%p1137_p11) target bundleno = 102 (0x66), region = 56 }
  0x5f   : > { %259 = vst [vmem:[%s1900_s14] sm:$0xff] %v1725_v1  ;;  %260 = vst [vmem:[%s1900_s14 + $0x8] sm:$0xff] %v1725_v1 }
  0x60   : > { %261 = vst [vmem:[%s1900_s14 + $0x10] sm:$0xff] %v1725_v1  ;;  %262 = vst [vmem:[%s1900_s14 + $0x18] sm:$0xff] %v1725_v1 }
  0x63   : > { %v1726_v2 = vmov 0.0  }
  0x64   : > { %1138 = vst [vmem:[%s1900_s14 + $0xa0] sm:$0xff] %v1726_v2  ;;  %1139 = vst [vmem:[%s1900_s14 + $0xa8] sm:$0xff] %v1726_v2 }
  0x65   : > { %1140 = vst [vmem:[%s1900_s14 + $0xb0] sm:$0xff] %v1726_v2  ;;  %1141 = vst [vmem:[%s1900_s14 + $0xb8] sm:$0xff] %v1726_v2 }
  0x66 PF: > { %s1213_s17 = sshll.u32 %s1702_s21, 6  ;;  %s2450_s11 = sshll.u32 %s1706_s22, 8 }
  0x67   : > { %s275_s15 = sadd.s32 %s1213_s17, %s2450_s11  ;;  %s990_s16 = scalar_lea.vmem %s1900_s14, 40 [#allocation2] }
  0x68   : > { %s1145_s26 = sshll.u32 %s275_s15, 4  ;;  %s280_s27 = smul.u32 3, %s2515_s30 }
  0x69   : > { %s1920_s10 = scalar_lea.hbm %s2441_s0, %s1145_s26  ;;  %s283_s29 = sshll.u32 %s990_s16, 4  ;;  %s1922_s29 = int_to_ptr.vmem [resolvable:$true] %s283_s29 }
  0x6a   : > { %s1142_s1 = sshll.u32 %s1702_s21, 2  ;;  %s1925_s3 = scalar_lea.sflag [#allocation3], %s280_s27 }
  0x6b   : > { %s1928_s28 = scalar_lea.hbm %s1920_s10, 1024  ;;  %s1935_s6 = scalar_lea.hbm %s2441_s0, 8192 }
  0x6c   : > { %p1458_p13 = scmp.ne.s32.totalorder %s1920_s10, %s1928_s28  ;;  %p1460_p2 = scmp.lt.s32.totalorder %s1920_s10, %s2441_s0 }
  0x6d   : > { %p1461_p4 = scmp.lt.s32.totalorder %s1935_s6, %s1928_s28 }
  0x6f   : > { %p1462_p5 = por %p1461_p4, %p1460_p2 }
  0x71   : > { %p1463_p6 = pnand %p1462_p5, %p1458_p13 }
  0x73   : > { %1466 = shalt.err (!%p1463_p6)  }
  0x74   : > { %s1467_s16 = scalar_lea.vmem %s1922_s29, 1024  ;;  %s1727_s27 = smov [#allocation2]  }
  0x75   : > { %p1468_p7 = scmp.ne.s32.totalorder %s1922_s29, %s1467_s16  ;;  %s1469_s11 = sshll.u32 %s1727_s27, 4  ;;  %s1945_s11 = int_to_ptr.vmem [resolvable:$false] %s1469_s11 }
  0x76   : > { %s1948_s17 = scalar_lea.vmem %s1945_s11, 6144  ;;  %p1472_p9 = scmp.lt.s32.totalorder %s1922_s29, %s1945_s11 }
  0x77   : > { %p1473_p0 = scmp.lt.s32.totalorder %s1948_s17, %s1467_s16 }
  0x79   : > { %p1474_p10 = por %p1473_p0, %p1472_p9 }
  0x7b   : > { %p1475_p12 = pnand %p1474_p10, %p1468_p7 }
  0x7d   : > { %1478 = shalt.err (!%p1475_p12)  }
  0x7e   : > { %s1728_s15 = smov 256   ;;  %s1729_s26 = smov 512  }
  0x7f   : > { %s1730_s9 = smov 16   ;;  %p1308_p1 = scmp.gt.s32.totalorder %s1702_s21, 0 }
  0x80   : > { %286 = dma.hbm_to_vmem [thread:$0]  %s1920_s10, 1024, %s1922_s29, %s1925_s3, %s1728_s15, %s1729_s26, %s1730_s9 }
  0x81   : > { %s1147_s16 = sadd.s32 4294967295, %s1142_s1  ;;  %s1000_s27 = scalar_lea.vmem %s1900_s14, 8 [#allocation2] }
  0x82   : > { %s1148_s24 = sshll.u32 %s1147_s16, 4  ;;  %s1003_s23 = scalar_lea.sflag %s1925_s3, 1 [#allocation3] }
  0x83   : > { %s2487_s13 = sshll.u32 %s1706_s22, 8  ;;  %s307_s8 = sshll.u32 %s1000_s27, 4  ;;  %s308_s8 = int_to_ptr.vmem [resolvable:$true] %s307_s8 }
  0x84   : > { %s293_s20 = sadd.s32 %s1148_s24, %s2487_s13 }
  0x85   : > { %s1149_s18 = sshll.u32 %s293_s20, 4 }
  0x86   : > { %s295_s7 = scalar_lea.hbm %s2441_s0, %s1149_s18 }
  0x87   : > { %s1479_s19 = scalar_lea.hbm %s295_s7, 256  ;;  %p1484_p4 = scmp.lt.s32.totalorder %s295_s7, %s2441_s0 }
  0x88   : > { %p1480_p11 = scmp.ne.s32.totalorder %s295_s7, %s1479_s19  ;;  %p1485_p5 = scmp.lt.s32.totalorder %s1935_s6, %s1479_s19 }
  0x8a   : > { %p1481_p13 = pnand %p1480_p11, %p1308_p1  ;;  %p1486_p6 = por %p1485_p5, %p1484_p4 }
  0x8c   : > { %p1482_p2 = pneg %p1481_p13 }
  0x8e   : > { %p1487_p7 = pnand %p1486_p6, %p1482_p2 }
  0x90   : > { %1490 = shalt.err (!%p1487_p7)  }
  0x91   : > { %s1491_s1 = scalar_lea.vmem %s308_s8, 256  ;;  %p1498_p12 = scmp.lt.s32.totalorder %s308_s8, %s1945_s11 }
  0x92   : > { %p1492_p9 = scmp.ne.s32.totalorder %s308_s8, %s1491_s1  ;;  %p1499_p8 = scmp.lt.s32.totalorder %s1948_s17, %s1491_s1 }
  0x94   : > { %p1493_p0 = pnand %p1492_p9, %p1308_p1  ;;  %p1500_p11 = por %p1499_p8, %p1498_p12 }
  0x96   : > { %p1494_p10 = pneg %p1493_p0 }
  0x98   : > { %p1501_p13 = pnand %p1500_p11, %p1494_p10 }
  0x9a   : > { %1504 = shalt.err (!%p1501_p13)  }
  0x9b   : > { %1280 = dma.hbm_to_vmem [thread:$0]  (%p1308_p1), %s295_s7, 256, %s308_s8, %s1003_s23 }
  0x9c   : > { %p1309_p2 = scmp.lt.s32.totalorder %s1702_s21, 3  ;;  %s1013_s5 = scalar_lea.vmem %s1900_s14, 168 [#allocation2] }
  0x9d   : > { %s1016_s18 = scalar_lea.sflag %s1925_s3, 2 [#allocation3]  ;;  %s331_s19 = sshll.u32 %s1013_s5, 4  ;;  %s332_s19 = int_to_ptr.vmem [resolvable:$true] %s331_s19 }
  0x9e   : > { %s1531_s20 = scalar_lea.hbm %s1920_s10, 1280  ;;  %p1510_p6 = scmp.lt.s32.totalorder %s1928_s28, %s2441_s0 }
  0x9f   : > { %p1506_p8 = scmp.ne.s32.totalorder %s1928_s28, %s1531_s20  ;;  %p1511_p7 = scmp.lt.s32.totalorder %s1935_s6, %s1531_s20 }
  0xa1   : > { %p1507_p4 = pnand %p1506_p8, %p1309_p2  ;;  %p1512_p9 = por %p1511_p7, %p1510_p6 }
  0xa3   : > { %p1508_p5 = pneg %p1507_p4 }
  0xa5   : > { %p1513_p0 = pnand %p1512_p9, %p1508_p5 }
  0xa7   : > { %1516 = shalt.err (!%p1513_p0)  }
  0xa8   : > { %s1517_s13 = scalar_lea.vmem %s332_s19, 256  ;;  %p1524_p11 = scmp.lt.s32.totalorder %s332_s19, %s1945_s11 }
  0xa9   : > { %p1518_p1 = scmp.ne.s32.totalorder %s332_s19, %s1517_s13  ;;  %p1525_p13 = scmp.lt.s32.totalorder %s1948_s17, %s1517_s13 }
  0xab   : > { %p1519_p10 = pnand %p1518_p1, %p1309_p2  ;;  %p1526_p8 = por %p1525_p13, %p1524_p11 }
  0xad   : > { %p1520_p12 = pneg %p1519_p10 }
  0xaf   : > { %p1527_p4 = pnand %p1526_p8, %p1520_p12 }
  0xb1   : > { %1530 = shalt.err (!%p1527_p4)  }
  0xb2   : > { %1282 = dma.hbm_to_vmem [thread:$0]  (%p1309_p2), %s1928_s28, 256, %s332_s19, %s1016_s18 }
  0xb3 PF: > { %s1998_s3 = sadd.s32 1, %s1702_s21 }
  0xb4   : > { %p1155_p5 = scmp.ge.s32.totalorder %s1998_s3, 4 }
  0xb5   : > { %p340_p6 = scmp.lt.s32.totalorder (!%p1155_p5), %s1998_s3, 0  ;;  %s341_s23 = ssub.s32 (!%p1155_p5), 0, %s1998_s3 }
  0xb6   : > { %339 = sbr.rel (%p1155_p5) target bundleno = 298 (0x12a), region = 76  ;;  %s1156_s7 = smin.u32 (!%p1155_p5), %s341_s23, %s1998_s3 }
  0xb7   : > { %s343_s8 = sand.u32 (!%p1155_p5), 1, %s1156_s7   ;;  %p1159_p2 = scmp.gt.s32.totalorder (!%p1155_p5), %s1998_s3, 1 }
  0xb8   : > { %s344_s14 = ssub.s32 (!%p1155_p5), 0, %s343_s8 }
  0xbb   : > { %s2517_s14 = smov (!%p340_p6, %s344_s14), %s343_s8  ;;  %355 = sbr.rel (%p1159_p2) target bundleno = 200 (0xc8), region = 80 }
  0xbc   : > { %p1158_p7 = scmp.lt.s32.totalorder %s2517_s14, 0  ;;  %s350_s11 = sadd.s32 2, %s2517_s14 }
  0xbe   : > { %s2519_s11 = smov (!%p1158_p7, %s350_s11), %s2517_s14 }
  0xbf   : > { %s356_s28 = smul.u32 (!%p1159_p2), 192, %s2519_s11 }
  0xc0   : > { %v1731_v3 = vmov 0.0  }
  0xc1   : > { %s357_s10 = scalar_lea.vmem [#allocation2], %s356_s28 }
  0xc2   : > { %358 = vst [vmem:[%s357_s10] sm:$0xff] %v1731_v3  ;;  %359 = vst [vmem:[%s357_s10 + $0x20] sm:$0xff] %v1731_v3 }
  0xc3   : > { %360 = vst [vmem:[%s357_s10 + $0x40] sm:$0xff] %v1731_v3  ;;  %361 = vst [vmem:[%s357_s10 + $0x60] sm:$0xff] %v1731_v3 }
  0xc4   : > { %362 = vst [vmem:[%s357_s10 + $0x80] sm:$0xff] %v1731_v3  ;;  %363 = vst [vmem:[%s357_s10 + $0xa0] sm:$0xff] %v1731_v3 }
  0xc5   : > { %364 = vst [vmem:[%s357_s10 + $0x18] sm:$0xff] %v1731_v3  ;;  %365 = vst [vmem:[%s357_s10 + $0x38] sm:$0xff] %v1731_v3 }
  0xc6   : > { %366 = vst [vmem:[%s357_s10 + $0x58] sm:$0xff] %v1731_v3  ;;  %367 = vst [vmem:[%s357_s10 + $0x78] sm:$0xff] %v1731_v3 }
  0xc7   : > { %368 = vst [vmem:[%s357_s10 + $0x98] sm:$0xff] %v1731_v3  ;;  %369 = vst [vmem:[%s357_s10 + $0xb8] sm:$0xff] %v1731_v3 }
  0xc8 PF: > { %p1160_p9 = scmp.ne.s32.totalorder %s1998_s3, 0 }
  0xc9   : > { %s374_s6 = smul.u32 (!%p1160_p9), 192, %s2519_s11 }
  0xca   : > { %373 = sbr.rel (%p1160_p9) target bundleno = 210 (0xd2), region = 84 }
  0xcb   : > { %s375_s17 = scalar_lea.vmem (!%p1160_p9), [#allocation2], %s374_s6 }
  0xcf   : > { %v1732_v4 = vmov 0.0  }
  0xd0   : > { %376 = vst [vmem:[%s375_s17] sm:$0xff] %v1732_v4  ;;  %377 = vst [vmem:[%s375_s17 + $0x8] sm:$0xff] %v1732_v4 }
  0xd1   : > { %378 = vst [vmem:[%s375_s17 + $0x10] sm:$0xff] %v1732_v4  ;;  %379 = vst [vmem:[%s375_s17 + $0x18] sm:$0xff] %v1732_v4 }
  0xd2 PF: > { %p1161_p0 = scmp.ne.s32.totalorder %s1998_s3, 3 }
  0xd3   : > { %s384_s26 = smul.u32 (!%p1161_p0), 192, %s2519_s11 }
  0xd4   : > { %383 = sbr.rel (%p1161_p0) target bundleno = 220 (0xdc), region = 88 }
  0xd5   : > { %s385_s9 = scalar_lea.vmem (!%p1161_p0), [#allocation2], %s384_s26 }
  0xd9   : > { %v1733_v5 = vmov 0.0  }
  0xda   : > { %1162 = vst [vmem:[%s385_s9 + $0xa0] sm:$0xff] %v1733_v5  ;;  %1163 = vst [vmem:[%s385_s9 + $0xa8] sm:$0xff] %v1733_v5 }
  0xdb   : > { %1164 = vst [vmem:[%s385_s9 + $0xb0] sm:$0xff] %v1733_v5  ;;  %1165 = vst [vmem:[%s385_s9 + $0xb8] sm:$0xff] %v1733_v5 }
  0xdc PF: > { %s1167_s16 = sshll.u32 %s1706_s22, 8  ;;  %s1168_s27 = sshll.u32 %s1702_s21, 6 }
  0xdd   : > { %s1025_s29 = sadd.s32 %s1168_s27, %s1167_s16  ;;  %s1029_s15 = smul.u32 192, %s2519_s11 }
  0xde   : > { %s1170_s1 = sshll.u32 %s1025_s29, 4  ;;  %s400_s5 = smul.u32 3, %s2519_s11 }
  0xdf   : > { %s2021_s20 = scalar_lea.hbm %s2441_s0, %s1170_s1  ;;  %s2026_s25 = scalar_lea.vmem [#allocation2], %s1029_s15 }
  0xe0   : > { %s2024_s24 = scalar_lea.hbm %s2021_s20, 1024  ;;  %s1031_s13 = scalar_lea.vmem %s2026_s25, 40 [#allocation2] }
  0xe1   : > { %s403_s23 = sshll.u32 %s1031_s13, 4  ;;  %s2029_s7 = scalar_lea.sflag [#allocation3], %s400_s5  ;;  %s404_s23 = int_to_ptr.vmem [resolvable:$true] %s403_s23 }
  0xe2   : > { %s2032_s8 = scalar_lea.hbm %s2021_s20, 2048  ;;  %s2039_s28 = scalar_lea.hbm %s2441_s0, 8192 }
  0xe3   : > { %p1533_p1 = scmp.ne.s32.totalorder %s2024_s24, %s2032_s8  ;;  %p1535_p10 = scmp.lt.s32.totalorder %s2024_s24, %s2441_s0 }
  0xe4   : > { %p1536_p12 = scmp.lt.s32.totalorder %s2039_s28, %s2032_s8 }
  0xe6   : > { %p1537_p11 = por %p1536_p12, %p1535_p10 }
  0xe8   : > { %p1538_p13 = pnand %p1537_p11, %p1533_p1 }
  0xea   : > { %1541 = shalt.err (!%p1538_p13)  }
  0xeb   : > { %s1542_s17 = scalar_lea.vmem %s404_s23, 1024  ;;  %s1734_s26 = smov [#allocation2]  }
  0xec   : > { %p1543_p8 = scmp.ne.s32.totalorder %s404_s23, %s1542_s17  ;;  %s1544_s9 = sshll.u32 %s1734_s26, 4  ;;  %s2047_s9 = int_to_ptr.vmem [resolvable:$false] %s1544_s9 }
  0xed   : > { %s2050_s27 = scalar_lea.vmem %s2047_s9, 6144  ;;  %p1547_p4 = scmp.lt.s32.totalorder %s404_s23, %s2047_s9 }
  0xee   : > { %p1548_p5 = scmp.lt.s32.totalorder %s2050_s27, %s1542_s17 }
  0xf0   : > { %p1549_p6 = por %p1548_p5, %p1547_p4 }
  0xf2   : > { %p1550_p7 = pnand %p1549_p6, %p1543_p8 }
  0xf4   : > { %1553 = shalt.err (!%p1550_p7)  }
  0xf5   : > { %s1735_s29 = smov 256   ;;  %s1736_s15 = smov 512  }
  0xf6   : > { %s1737_s1 = smov 16   ;;  %s1215_s5 = sshll.u32 %s1702_s21, 2 }
  0xf7   : > { %406 = dma.hbm_to_vmem [thread:$0]  %s2024_s24, 1024, %s404_s23, %s2029_s7, %s1735_s29, %s1736_s15, %s1737_s1 }
  0xf8   : > { %s1216_s18 = sadd.s32 4, %s1215_s5  ;;  %p1310_p2 = scmp.gt.s32.totalorder %s1998_s3, 0 }
  0xf9   : > { %s1172_s19 = sadd.s32 4294967295, %s1216_s18  ;;  %s1041_s13 = scalar_lea.vmem %s2026_s25, 8 [#allocation2] }
  0xfa   : > { %s1173_s14 = sshll.u32 %s1172_s19, 4  ;;  %s1044_s11 = scalar_lea.sflag %s2029_s7, 1 [#allocation3] }
  0xfb   : > { %s413_s10 = sadd.s32 %s1173_s14, %s1167_s16  ;;  %s427_s6 = sshll.u32 %s1041_s13, 4  ;;  %s428_s6 = int_to_ptr.vmem [resolvable:$true] %s427_s6 }
  0xfc   : > { %s1174_s17 = sshll.u32 %s413_s10, 4 }
  0xfd   : > { %s415_s12 = scalar_lea.hbm %s2441_s0, %s1174_s17 }
  0xfe   : > { %s1555_s2 = scalar_lea.hbm %s415_s12, 256  ;;  %p1560_p10 = scmp.lt.s32.totalorder %s415_s12, %s2441_s0 }
  0xff   : > { %p1556_p9 = scmp.ne.s32.totalorder %s415_s12, %s1555_s2  ;;  %p1561_p12 = scmp.lt.s32.totalorder %s2039_s28, %s1555_s2 }
 0x101   : > { %p1557_p0 = pnand %p1556_p9, %p1310_p2  ;;  %p1562_p11 = por %p1561_p12, %p1560_p10 }
 0x103   : > { %p1558_p1 = pneg %p1557_p0 }
 0x105   : > { %p1563_p13 = pnand %p1562_p11, %p1558_p1 }
 0x107   : > { %1566 = shalt.err (!%p1563_p13)  }
 0x108   : > { %s1567_s16 = scalar_lea.vmem %s428_s6, 256  ;;  %p1574_p6 = scmp.lt.s32.totalorder %s428_s6, %s2047_s9 }
 0x109   : > { %p1568_p8 = scmp.ne.s32.totalorder %s428_s6, %s1567_s16  ;;  %p1575_p7 = scmp.lt.s32.totalorder %s2050_s27, %s1567_s16 }
 0x10b   : > { %p1569_p4 = pnand %p1568_p8, %p1310_p2  ;;  %p1576_p9 = por %p1575_p7, %p1574_p6 }
 0x10d   : > { %p1570_p5 = pneg %p1569_p4 }
 0x10f   : > { %p1577_p0 = pnand %p1576_p9, %p1570_p5 }
 0x111   : > { %1580 = shalt.err (!%p1577_p0)  }
 0x112   : > { %1284 = dma.hbm_to_vmem [thread:$0]  (%p1310_p2), %s415_s12, 256, %s428_s6, %s1044_s11 }
 0x113   : > { %p1311_p1 = scmp.lt.s32.totalorder %s1998_s3, 3  ;;  %s1054_s2 = scalar_lea.vmem %s2026_s25, 168 [#allocation2] }
 0x114   : > { %s1057_s4 = scalar_lea.sflag %s2029_s7, 2 [#allocation3]  ;;  %s451_s29 = sshll.u32 %s1054_s2, 4  ;;  %s452_s29 = int_to_ptr.vmem [resolvable:$true] %s451_s29 }
 0x115   : > { %s1607_s15 = scalar_lea.hbm %s2021_s20, 2304  ;;  %p1586_p13 = scmp.lt.s32.totalorder %s2032_s8, %s2441_s0 }
 0x116   : > { %p1582_p10 = scmp.ne.s32.totalorder %s2032_s8, %s1607_s15  ;;  %p1587_p8 = scmp.lt.s32.totalorder %s2039_s28, %s1607_s15 }
 0x118   : > { %p1583_p12 = pnand %p1582_p10, %p1311_p1  ;;  %p1588_p4 = por %p1587_p8, %p1586_p13 }
 0x11a   : > { %p1584_p11 = pneg %p1583_p12 }
 0x11c   : > { %p1589_p5 = pnand %p1588_p4, %p1584_p11 }
 0x11e   : > { %1592 = shalt.err (!%p1589_p5)  }
 0x11f   : > { %s1593_s18 = scalar_lea.vmem %s452_s29, 256  ;;  %p1600_p9 = scmp.lt.s32.totalorder %s452_s29, %s2047_s9 }
 0x120   : > { %p1594_p2 = scmp.ne.s32.totalorder %s452_s29, %s1593_s18  ;;  %p1601_p0 = scmp.lt.s32.totalorder %s2050_s27, %s1593_s18 }
 0x122   : > { %p1595_p6 = pnand %p1594_p2, %p1311_p1  ;;  %p1602_p10 = por %p1601_p0, %p1600_p9 }
 0x124   : > { %p1596_p7 = pneg %p1595_p6 }
 0x126   : > { %p1603_p12 = pnand %p1602_p10, %p1596_p7 }
 0x128   : > { %1606 = shalt.err (!%p1603_p12)  }
 0x129   : > { %1286 = dma.hbm_to_vmem [thread:$0]  (%p1311_p1), %s2032_s8, 256, %s452_s29, %s1057_s4 }
 0x12a PF: > { %s455_s12 = smul.u32 3, %s2515_s30 }
 0x12c   : > { %s456_s20 = scalar_lea.sflag [#allocation3], %s455_s12 }
 0x12d   : > { %1674 = dma.done.wait %s456_s20, 1024 }
 0x12e   : > { %1675 = vsyncadd %s456_s20, 4294966272  ;;  %p1312_p11 = scmp.gt.s32.totalorder %s1702_s21, 0  ;;  %s1062_s25 = scalar_lea.sflag %s456_s20, 1 [#allocation3] }
 0x130   : > { %1677 = dma.done.wait (%p1312_p11), %s1062_s25, 256 }
 0x131   : > { %1679 = vsyncadd (%p1312_p11), %s1062_s25, 4294967040  ;;  %p1313_p13 = scmp.lt.s32.totalorder %s1702_s21, 3  ;;  %s1065_s7 = scalar_lea.sflag %s456_s20, 2 [#allocation3] }
 0x133   : > { %1681 = dma.done.wait (%p1313_p13), %s1065_s7, 256 }
 0x134   : > { %1683 = vsyncadd (%p1313_p13), %s1065_s7, 4294967040  ;;  %v498_v6 = vlaneseq  ;;  %v1397_v7 = vld [vmem:[#allocation7 + $0x38] sm:$0xff]   ;;  %v1398_v8 = vld [vmem:[#allocation7 + $0x30] sm:$0xff]   ;;  %s484_s3 = smul.u32 192, %s2515_s30  ;;  %s2488_s9 = sld [smem:[#allocation41_spill]] }
 0x135   : > { %1231 = vmatprep.subr.bf16.mxu0 %v1397_v7  ;;  %1255 = vmatprep.subr.bf16.mxu1 %v1397_v7  ;;  %v1399_v10 = vld [vmem:[#allocation7 + $0x28] sm:$0xff]   ;;  %v1400_v13 = vld [vmem:[#allocation7 + $0x20] sm:$0xff]   ;;  %v481_v14 = vld [vmem:[#allocation4] sm:$0x7]  ;;  %s2489_s27 = sld [smem:[#allocation39_spill]]  ;;  %s1218_s11 = sshll.u32 %s1702_s21, 3 }
 0x136   : > { %v499_v9 = vshrl.u32 %v498_v6, 7  ;;  %1232 = vmatpush3.bf16.msra.mxu0 %v1397_v7  ;;  %1263 = vmatpush3.bf16.msra.mxu1 %v1397_v7  ;;  %v482_v15 = vld [vmem:[#allocation4 + $0x4] sm:$0x7]  ;;  %v2100_v16 = vld [vmem:[#allocation4 + $0x8] sm:$0x7]  ;;  %s2102_s8 = scalar_lea.vmem [#allocation2], %s484_s3 }
 0x137   : > { %1233 = vmatprep.subr.bf16.mxu0 %v1398_v8  ;;  %1256 = vmatprep.subr.bf16.mxu1 %v1398_v8  ;;  %v486_v17 = vld [vmem:[%s2102_s8 + $0x7] sm:$0xff]  ;;  %v487_v18 = vld [vmem:[%s2102_s8 + $0xf] sm:$0xff]  ;;  %v1402_v47 = vld [vmem:[#allocation7 + $0x10] sm:$0xff]   ;;  %s2490_s14 = sld [smem:[#allocation43_spill]]  ;;  %s1203_s10 = sshll.u32 %s1706_s22, 5 }
 0x138   : > { %v500_v11 = vsub.s32 0, %v499_v9  ;;  %v564_v12 = vsub.s32 1, %v499_v9  ;;  %v488_v19 = vld [vmem:[%s2102_s8 + $0x27] sm:$0xff]  ;;  %v489_v23 = vld [vmem:[%s2102_s8 + $0x2f] sm:$0xff]  ;;  %v636_v31 = vsub.s32 2, %v499_v9  ;;  %s904_s6 = sadd.s32 %s1218_s11, %s1203_s10  ;;  %s2491_s21 = sld [smem:[#allocation29_spill]] }
 0x139   : > { %v1401_v25 = vld [vmem:[#allocation7 + $0x18] sm:$0xff]   ;;  %v551_v29 = vld [vmem:[%s2102_s8 + $0x10] sm:$0xff]  ;;  %s1204_s17 = sshll.u32 %s904_s6, 7  ;;  %s2493_s16 = sld [smem:[#allocation44_spill]] }
 0x13a   : > { %1234 = vmatpush3.bf16.msra.mxu0 %v1398_v8  ;;  %1264 = vmatpush3.bf16.msra.mxu1 %v1398_v8  ;;  %v2107_v20 = vrot.slane %v481_v14, %v500_v11  ;;  %v2109_v21 = vrot.slane %v482_v15, %v500_v11  ;;  %v2112_v22 = vrot.slane %v2100_v16, %v500_v11  ;;  %v550_v28 = vld [vmem:[%s2102_s8 + $0x8] sm:$0xff]  ;;  %v2136_v39 = vld [vmem:[%s2102_s8 + $0x30] sm:$0xff]  ;;  %s1738_s1 = smov [#allocation9]  }
 0x13b   : > { %1235 = vmatprep.subr.bf16.mxu0 %v1399_v10  ;;  %1257 = vmatprep.subr.bf16.mxu1 %v1399_v10  ;;  %v2115_v24 = vrot.slane %v481_v14, %v564_v12  ;;  %v2121_v30 = vrot.slane %v482_v15, %v564_v12  ;;  %v490_v32 = vld [vmem:[%s2102_s8 + $0x47] sm:$0xff]  ;;  %v2125_v33 = vld [vmem:[%s2102_s8 + $0x4f] sm:$0xff]  ;;  %v2139_v40 = vrot.slane %v2100_v16, %v564_v12  ;;  %s907_s26 = sshll.u32 %s2489_s27, 4  ;;  %s1612_s5 = sshll.u32 %s1738_s1, 4  ;;  %s2383_s26 = int_to_ptr.vmem [resolvable:$true] %s907_s26  ;;  %s1613_s5 = int_to_ptr.vmem [resolvable:$false] %s1612_s5 }
 0x13c   : > { %v502_v26 = vmul.f32 %v2107_v20, %v486_v17  ;;  %v503_v27 = vmul.f32 %v2107_v20, %v487_v18  ;;  %v514_v34 = vmul.f32 %v2109_v21, %v488_v19  ;;  %v515_v35 = vmul.f32 %v2109_v21, %v489_v23  ;;  %v2130_v36 = vld [vmem:[%s2102_s8 + $0x28] sm:$0xff]  ;;  %v2154_v53 = vld [vmem:[%s2102_s8 + $0x50] sm:$0xff]  ;;  %s1608_s15 = scalar_lea.vmem %s2383_s26, 1024  ;;  %s1614_s18 = scalar_lea.vmem %s1613_s5, 2048 }
 0x13d   : > { %v534_v37 = vmul.f32 %v2112_v22, %v490_v32  ;;  %v535_v38 = vmul.f32 %v2112_v22, %v2125_v33  ;;  %v566_v43 = vmul.f32 %v2115_v24, %v550_v28  ;;  %v567_v44 = vmul.f32 %v2115_v24, %v551_v29  ;;  %v622_v51 = vld [vmem:[%s2102_s8 + $0x9] sm:$0xff]  ;;  %v623_v54 = vld [vmem:[%s2102_s8 + $0x11] sm:$0xff]  ;;  %p1609_p1 = scmp.ne.s32.totalorder %s2383_s26, %s1608_s15  ;;  %p1615_p5 = scmp.lt.s32.totalorder %s2383_s26, %s1613_s5 }
 0x13e   : > { %1236 = vmatpush3.bf16.msra.mxu0 %v1399_v10  ;;  %1265 = vmatpush3.bf16.msra.mxu1 %v1399_v10  ;;  %v522_v41 = vadd.f32 %v514_v34, %v502_v26  ;;  %v523_v42 = vadd.f32 %v515_v35, %v503_v27  ;;  %v586_v45 = vmul.f32 %v2121_v30, %v2130_v36  ;;  %v2151_v52 = vld [vmem:[%s2102_s8 + $0x48] sm:$0xff]  ;;  %v2167_v61 = vld [vmem:[%s2102_s8 + $0x31] sm:$0xff]  ;;  %s2494_s4 = sand.u32 1, %s2491_s21   ;;  %p1616_p2 = scmp.lt.s32.totalorder %s1614_s18, %s1608_s15 }
 0x13f   : > { %1237 = vmatprep.subr.bf16.mxu0 %v1400_v13  ;;  %1258 = vmatprep.subr.bf16.mxu1 %v1400_v13  ;;  %v2145_v46 = vrot.slane %v481_v14, %v636_v31  ;;  %v587_v50 = vmul.f32 %v2121_v30, %v2136_v39  ;;  %v2157_v55 = vrot.slane %v482_v15, %v636_v31  ;;  %v2164_v60 = vld [vmem:[%s2102_s8 + $0x29] sm:$0xff]  ;;  %v1403_v2 = vld [vmem:[#allocation7 + $0x8] sm:$0xff]   ;;  %s2381_s2 = scalar_lea.hbm %s2493_s16, %s1204_s17  ;;  %s2390_s29 = scalar_lea.sflag [#allocation6], %s2494_s4 }
 0x140   : > { %v542_v48 = vadd.f32 %v534_v37, %v522_v41  ;;  %v543_v49 = vadd.f32 %v535_v38, %v523_v42  ;;  %v606_v58 = vmul.f32 %v2139_v40, %v2151_v52  ;;  %v607_v59 = vmul.f32 %v2139_v40, %v2154_v53  ;;  %v2177_v1 = vld [vmem:[%s2102_s8 + $0x67] sm:$0xff]  ;;  %v2181_v6 = vld [vmem:[%s2102_s8 + $0x6f] sm:$0xff]  ;;  %p1610_p8 = pnand %p1609_p1, %p1823_p3  ;;  %p1617_p6 = por %p1616_p2, %p1615_p5 }
 0x141   : > { %v2170_v62 = vmul.f32 %v2107_v20, %v488_v19  ;;  %v2173_v63 = vmul.f32 %v2107_v20, %v489_v23  ;;  %v638_v0 = vmul.f32 %v2145_v46, %v622_v51  ;;  %v639_v5 = vmul.f32 %v2145_v46, %v623_v54  ;;  %v2195_v14 = vld [vmem:[%s2102_s8 + $0x87] sm:$0xff]  ;;  %v2210_v23 = vld [vmem:[%s2102_s8 + $0x8f] sm:$0xff] }
 0x142   : > { %1238 = vmatpush3.bf16.msra.mxu0 %v1400_v13  ;;  %1266 = vmatpush3.bf16.msra.mxu1 %v1400_v13  ;;  %v574_v56 = vadd.f32 %v566_v43, %v542_v48  ;;  %v575_v57 = vadd.f32 %v567_v44, %v543_v49  ;;  %v658_v7 = vmul.f32 %v2157_v55, %v2164_v60  ;;  %v2192_v13 = vld [vmem:[%s2102_s8 + $0x49] sm:$0xff]  ;;  %p1611_p4 = pneg %p1610_p8 }
 0x143   : > { %1239 = vmatprep.subr.bf16.mxu0 %v1401_v25  ;;  %1259 = vmatprep.subr.bf16.mxu1 %v1401_v25  ;;  %v659_v8 = vmul.f32 %v2157_v55, %v2167_v61  ;;  %v2188_v9 = vrot.slane %v2100_v16, %v636_v31  ;;  %v506_v10 = vmul.f32 %v2107_v20, %v490_v32  ;;  %v2205_v16 = vld [vmem:[%s2102_s8 + $0x51] sm:$0xff]  ;;  %v2223_v42 = vld [vmem:[%s2102_s8 + $0x68] sm:$0xff] }
 0x144   : > { %v594_v3 = vadd.f32 %v586_v45, %v574_v56  ;;  %v595_v4 = vadd.f32 %v587_v50, %v575_v57  ;;  %v507_v15 = vmul.f32 %v2107_v20, %v2125_v33  ;;  %v518_v17 = vmul.f32 %v2109_v21, %v2177_v1  ;;  %v1404_v26 = vld [vmem:[#allocation7] sm:$0xff]   ;;  %v2237_v45 = vld [vmem:[%s2488_s9] ss:$0 sm:$0xff]  ;;  %p1618_p7 = pnand %p1617_p6, %p1611_p4 }
 0x145   : > { %v2202_v18 = vmul.f32 %v2109_v21, %v490_v32  ;;  %v678_v19 = vmul.f32 %v2188_v9, %v2192_v13  ;;  %v679_v29 = vmul.f32 %v2188_v9, %v2205_v16  ;;  %v517_v31 = vmul.f32 %v2109_v21, %v2125_v33  ;;  %v2226_v43 = vld [vmem:[%s2102_s8 + $0x70] sm:$0xff]  ;;  %v2242_v54 = vld [vmem:[%s2102_s8 + $0x88] sm:$0xff] }
 0x146   : > { %1240 = vmatpush3.bf16.msra.mxu0 %v1401_v25  ;;  %1267 = vmatpush3.bf16.msra.mxu1 %v1401_v25  ;;  %v614_v11 = vadd.f32 %v606_v58, %v594_v3  ;;  %v615_v12 = vadd.f32 %v607_v59, %v595_v4  ;;  %v519_v25 = vmul.f32 %v2109_v21, %v2181_v6  ;;  %v2247_v57 = vld [vmem:[%s2102_s8 + $0x90] sm:$0xff] }
 0x147   : > { %1241 = vmatprep.subr.bf16.mxu0 %v1402_v47  ;;  %1260 = vmatprep.subr.bf16.mxu1 %v1402_v47  ;;  %v526_v32 = vadd.f32 %v518_v17, %v506_v10  ;;  %v538_v35 = vmul.f32 %v2112_v22, %v2195_v14  ;;  %v539_v41 = vmul.f32 %v2112_v22, %v2210_v23 }
 0x148   : > { %v646_v27 = vadd.f32 %v638_v0, %v614_v11  ;;  %v647_v28 = vadd.f32 %v639_v5, %v615_v12  ;;  %v527_v34 = vadd.f32 %v519_v25, %v507_v15  ;;  %v570_v44 = vmul.f32 %v2115_v24, %v2151_v52  ;;  %v2264_v11 = vld [vmem:[%s2102_s8 + $0x69] sm:$0xff]  ;;  %v2269_v25 = vld [vmem:[%s2102_s8 + $0x71] sm:$0xff] }
 0x149   : > { %v2232_v33 = vmul.f32 %v2115_v24, %v2130_v36  ;;  %v571_v48 = vmul.f32 %v2115_v24, %v2154_v53  ;;  %v569_v56 = vmul.f32 %v2115_v24, %v2136_v39  ;;  %v590_v59 = vmul.f32 %v2121_v30, %v2223_v42 }
 0x14a   : > { %1242 = vmatpush3.bf16.msra.mxu0 %v1402_v47  ;;  %1268 = vmatpush3.bf16.msra.mxu1 %v1402_v47  ;;  %v666_v37 = vadd.f32 %v658_v7, %v646_v27  ;;  %v667_v38 = vadd.f32 %v659_v8, %v647_v28  ;;  %v546_v47 = vadd.f32 %v538_v35, %v526_v32  ;;  %v2276_v28 = vld [vmem:[%s2102_s8 + $0x89] sm:$0xff] }
 0x14b   : > { %1243 = vmatprep.subr.bf16.mxu0 %v1403_v2  ;;  %1261 = vmatprep.subr.bf16.mxu1 %v1403_v2  ;;  %v547_v51 = vadd.f32 %v539_v41, %v527_v34  ;;  %v591_v0 = vmul.f32 %v2121_v30, %v2226_v43  ;;  %v589_v7 = vmul.f32 %v2121_v30, %v2154_v53 }
 0x14c   : > { %v686_v49 = vadd.f32 %v678_v19, %v666_v37  ;;  %v687_v50 = vadd.f32 %v679_v29, %v667_v38  ;;  %v578_v58 = vadd.f32 %v570_v44, %v546_v47  ;;  %v610_v10 = vmul.f32 %v2139_v40, %v2242_v54  ;;  %v2279_v29 = vld [vmem:[%s2102_s8 + $0x91] sm:$0xff] }
 0x14d   : > { %v579_v5 = vadd.f32 %v571_v48, %v547_v51  ;;  %v611_v19 = vmul.f32 %v2139_v40, %v2247_v57  ;;  %v642_v32 = vmul.f32 %v2145_v46, %v2192_v13  ;;  %v643_v34 = vmul.f32 %v2145_v46, %v2205_v16 }
 0x14e   : > { %1244 = vmatpush3.bf16.msra.mxu0 %v1403_v2  ;;  %1269 = vmatpush3.bf16.msra.mxu1 %v1403_v2  ;;  %v2255_v2 = vmul.f32 %v2121_v30, %v2151_v52  ;;  %v701_v3 = vadd.f32 %v2237_v45, %v686_v49  ;;  %v702_v4 = vadd.f32 %v2237_v45, %v687_v50 }
 0x14f   : > { %1245 = vmatprep.subr.bf16.mxu0 %v1404_v26  ;;  %1262 = vmatprep.subr.bf16.mxu1 %v1404_v26  ;;  %v598_v8 = vadd.f32 %v590_v59, %v578_v58  ;;  %v599_v17 = vadd.f32 %v591_v0, %v579_v5  ;;  %v641_v35 = vmul.f32 %v2145_v46, %v2167_v61  ;;  %v496_v0 = vld [vmem:[%s2102_s8 + $0xa7] sm:$0xff] }
 0x150   : > { %v709_v12 = vmax.f32 %v701_v3, 0.0  ;;  %v710_v15 = vmax.f32 %v702_v4, 0.0  ;;  %v660_v41 = vmul.f32 %v2157_v55, %v2192_v13  ;;  %v520_v44 = vmul.f32 %v2109_v21, %v2195_v14 }
 0x151   : > { %v618_v27 = vadd.f32 %v610_v10, %v598_v8  ;;  %v619_v38 = vadd.f32 %v611_v19, %v599_v17  ;;  %v663_v48 = vmul.f32 %v2157_v55, %v2269_v25  ;;  %v682_v61 = vmul.f32 %v2188_v9, %v2276_v28 }
 0x152   : > { %1246 = vmatpush3.bf16.msra.mxu0 %v1404_v26  ;;  %1270 = vmatpush3.bf16.msra.mxu1 %v1404_v26  ;;  %v2273_v26 = vmul.f32 %v2145_v46, %v2164_v60  ;;  %v717_v37 = vpack.c.bf16 %v710_v15, %v709_v12  ;;  %v662_v60 = vmul.f32 %v2157_v55, %v2264_v11 }
 0x153   : > { %v650_v47 = vadd.f32 %v642_v32, %v618_v27  ;;  %v651_v49 = vadd.f32 %v643_v34, %v619_v38  ;;  %v683_v50 = vmul.f32 %v2188_v9, %v2279_v29  ;;  %v524_v51 = vadd.f32 %v2202_v18, %v2170_v62  ;;  %v497_v18 = vld [vmem:[%s2102_s8 + $0xaf] sm:$0xff] }
 0x154   : > { %1247 = vmatprep.mubr.bf16.mxu0 %v717_v37  ;;  %v525_v58 = vadd.f32 %v517_v31, %v2173_v63  ;;  %v536_v14 = vmul.f32 %v2112_v22, %v2177_v1  ;;  %v537_v59 = vmul.f32 %v2112_v22, %v2181_v6  ;;  %v521_v3 = vmul.f32 %v2109_v21, %v2210_v23 }
 0x155   : > { %v670_v13 = vadd.f32 %v662_v60, %v650_v47  ;;  %v572_v4 = vmul.f32 %v2115_v24, %v2223_v42  ;;  %v671_v5 = vadd.f32 %v663_v48, %v651_v49  ;;  %v608_v62 = vmul.f32 %v2139_v40, %v2223_v42  ;;  %v560_v60 = vld [vmem:[%s2102_s8 + $0xa8] sm:$0xff]  ;;  %v561_v49 = vld [vmem:[%s2102_s8 + $0xb0] sm:$0xff] }
 0x156   : > { %v544_v63 = vadd.f32 %v536_v14, %v524_v51  ;;  %v545_v31 = vadd.f32 %v537_v59, %v525_v58  ;;  %v609_v10 = vmul.f32 %v2139_v40, %v2226_v43  ;;  %v508_v15 = vmul.f32 %v2107_v20, %v2177_v1 }
 0x157   : > { %v690_v8 = vadd.f32 %v682_v61, %v670_v13  ;;  %v691_v12 = vadd.f32 %v683_v50, %v671_v5  ;;  %v509_v21 = vmul.f32 %v2107_v20, %v2181_v6  ;;  %v540_v23 = vmul.f32 %v2112_v22, %v496_v0 }
 0x158   : > { %v576_v19 = vadd.f32 %v2232_v33, %v544_v63  ;;  %v577_v27 = vadd.f32 %v569_v56, %v545_v31  ;;  %v541_v32 = vmul.f32 %v2112_v22, %v497_v18  ;;  %v573_v34 = vmul.f32 %v2115_v24, %v2226_v43  ;;  %v632_v18 = vld [vmem:[%s2102_s8 + $0xa9] sm:$0xff] }
 0x159   : > { %v705_v17 = vadd.f32 %v2237_v45, %v690_v8  ;;  %v706_v37 = vadd.f32 %v2237_v45, %v691_v12  ;;  %v528_v38 = vadd.f32 %v520_v44, %v508_v15  ;;  %v529_v1 = vadd.f32 %v521_v3, %v509_v21 }
 0x15a   : > { %v592_v20 = vmul.f32 %v2121_v30, %v2242_v54  ;;  %v596_v47 = vadd.f32 %v2255_v2, %v576_v19  ;;  %v597_v48 = vadd.f32 %v589_v7, %v577_v27  ;;  %v593_v33 = vmul.f32 %v2121_v30, %v2247_v57 }
 0x15b   : > { %v713_v6 = vmax.f32 %v705_v17, 0.0  ;;  %v714_v22 = vmax.f32 %v706_v37, 0.0  ;;  %v548_v56 = vadd.f32 %v540_v23, %v528_v38  ;;  %v549_v61 = vadd.f32 %v541_v32, %v529_v1  ;;  %v1191_v1 = vld [vmem:[%s2490_s14] ss:$0 sm:$0xff] }
 0x15c   : > { %v661_v24 = vmul.f32 %v2157_v55, %v2205_v16  ;;  %v616_v44 = vadd.f32 %v608_v62, %v596_v47  ;;  %v617_v50 = vadd.f32 %v609_v10, %v597_v48  ;;  %v612_v51 = vmul.f32 %v2139_v40, %v560_v60 }
 0x15d   : > { %v719_v13 = vpack.c.bf16 %v714_v22, %v713_v6  ;;  %v580_v58 = vadd.f32 %v572_v4, %v548_v56  ;;  %v581_v2 = vadd.f32 %v573_v34, %v549_v61  ;;  %v613_v7 = vmul.f32 %v2139_v40, %v561_v49 }
 0x15e   : > { %v648_v14 = vadd.f32 %v2273_v26, %v616_v44  ;;  %v649_v30 = vadd.f32 %v641_v35, %v617_v50  ;;  %v680_v59 = vmul.f32 %v2188_v9, %v2264_v11  ;;  %v681_v16 = vmul.f32 %v2188_v9, %v2269_v25  ;;  %v633_v26 = vld [vmem:[%s2102_s8 + $0xb1] sm:$0xff] }
 0x15f   : > { %v644_v0 = vmul.f32 %v2145_v46, %v2264_v11  ;;  %v645_v3 = vmul.f32 %v2145_v46, %v2269_v25  ;;  %1251 = vmatprep.mubr.bf16.mxu1 %v719_v13  ;;  %v600_v4 = vadd.f32 %v592_v20, %v580_v58  ;;  %v601_v5 = vadd.f32 %v593_v33, %v581_v2 }
 0x160   : > { %v668_v62 = vadd.f32 %v660_v41, %v648_v14  ;;  %v669_v40 = vadd.f32 %v661_v24, %v649_v30  ;;  %v664_v35 = vmul.f32 %v2157_v55, %v2276_v28  ;;  %v665_v8 = vmul.f32 %v2157_v55, %v2279_v29 }
 0x161   : > { %v620_v63 = vadd.f32 %v612_v51, %v600_v4  ;;  %v621_v31 = vadd.f32 %v613_v7, %v601_v5  ;;  %v684_v46 = vmul.f32 %v2188_v9, %v632_v18  ;;  %v685_v25 = vmul.f32 %v2188_v9, %v633_v26 }
 0x162   : > { %v688_v10 = vadd.f32 %v680_v59, %v668_v62  ;;  %v689_v11 = vadd.f32 %v681_v16, %v669_v40 }
 0x163   : > { %v652_v12 = vadd.f32 %v644_v0, %v620_v63  ;;  %v653_v15 = vadd.f32 %v645_v3, %v621_v31 }
 0x164   : > { %v703_v41 = vadd.f32 %v2237_v45, %v688_v10  ;;  %v704_v21 = vadd.f32 %v2237_v45, %v689_v11 }
 0x165   : > { %v672_v23 = vadd.f32 %v664_v35, %v652_v12  ;;  %v673_v17 = vadd.f32 %v665_v8, %v653_v15 }
 0x166   : > { %v711_v28 = vmax.f32 %v703_v41, 0.0  ;;  %v712_v19 = vmax.f32 %v704_v21, 0.0 }
 0x167   : > { %v692_v27 = vadd.f32 %v684_v46, %v672_v23  ;;  %v693_v55 = vadd.f32 %v685_v25, %v673_v17 }
 0x168   : > { %v718_v29 = vpack.c.bf16 %v712_v19, %v711_v28 }
 0x169   : > { %v707_v32 = vadd.f32 %v2237_v45, %v692_v27  ;;  %v708_v34 = vadd.f32 %v2237_v45, %v693_v55 }
 0x16a   : > { %1248 = vmatmul.mubr.bf16.vlgmr.msra.gmra.mxu0 %v718_v29 }
 0x16b   : > { %v715_v9 = vmax.f32 %v707_v32, 0.0  ;;  %v716_v37 = vmax.f32 %v708_v34, 0.0 }
 0x16d   : > { %v720_v38 = vpack.c.bf16 %v716_v37, %v715_v9 }
 0x16f   : > { %1252 = vmatmul.mubr.bf16.vlgmr.msra.gmra.mxu1 %v720_v38 }
 0x22a   : > { %v1249_v60 = vpop.f32.mrf.mxu0 }
 0x22b   : > { %v859_v20 = vadd.f32 %v1249_v60, %v1191_v1 }
 0x22c   : > { %v819_v6 = vpop.f32.mrf.mxu0 }
 0x22d   : > { %v876_v47 = vadd.f32 %v859_v20, %v2151_v52  ;;  %v857_v48 = vadd.f32 %v1191_v1, %v819_v6 }
 0x22e   : > { %v1250_v49 = vpop.f32.mrf.mxu0 }
 0x22f   : > { %884 = vst [vmem:[%s2489_s27 + $0x10] sm:$0xff] %v876_v47  ;;  %v1253_v45 = vpop.f32.mrf.mxu1  ;;  %v874_v33 = vadd.f32 %v857_v48, %v2130_v36  ;;  %v860_v22 = vadd.f32 %v1250_v49, %v1191_v1 }
 0x230   : > { %v863_v56 = vadd.f32 %v1253_v45, %v1191_v1  ;;  %v822_v61 = vpop.f32.mrf.mxu0 }
 0x231   : > { %882 = vst [vmem:[%s2489_s27] sm:$0xff] %v874_v33  ;;  %v835_v24 = vpop.f32.mrf.mxu1  ;;  %v877_v52 = vadd.f32 %v860_v22, %v2154_v53  ;;  %v858_v44 = vadd.f32 %v1191_v1, %v822_v61 }
 0x232   : > { %v880_v50 = vadd.f32 %v863_v56, %v2242_v54  ;;  %v861_v51 = vadd.f32 %v1191_v1, %v835_v24 }
 0x233   : > { %885 = vst [vmem:[%s2489_s27 + $0x18] sm:$0xff] %v877_v52  ;;  %v1254_v13 = vpop.f32.mrf.mxu1  ;;  %v875_v36 = vadd.f32 %v858_v44, %v2136_v39 }
 0x234   : > { %888 = vst [vmem:[%s2489_s27 + $0x30] sm:$0xff] %v880_v50  ;;  %v878_v58 = vadd.f32 %v861_v51, %v2223_v42  ;;  %v864_v2 = vadd.f32 %v1254_v13, %v1191_v1 }
 0x235   : > { %883 = vst [vmem:[%s2489_s27 + $0x8] sm:$0xff] %v875_v36  ;;  %v838_v53 = vpop.f32.mrf.mxu1 }
 0x236   : > { %886 = vst [vmem:[%s2489_s27 + $0x20] sm:$0xff] %v878_v58  ;;  %v881_v54 = vadd.f32 %v864_v2, %v2247_v57  ;;  %v862_v7 = vadd.f32 %v1191_v1, %v838_v53 }
 0x238   : > { %889 = vst [vmem:[%s2489_s27 + $0x38] sm:$0xff] %v881_v54  ;;  %v879_v39 = vadd.f32 %v862_v7, %v2226_v43 }
 0x23a   : > { %887 = vst [vmem:[%s2489_s27 + $0x28] sm:$0xff] %v879_v39 }
 0x23b   : > { %1621 = shalt.err (!%p1618_p7)
}
 0x23c   : > { %s1622_s12 = scalar_lea.hbm %s2381_s2, 1024  ;;  %s1626_s7 = scalar_lea.hbm %s2493_s16, 8192 }
 0x23d   : > { %p1623_p9 = scmp.ne.s32.totalorder %s2381_s2, %s1622_s12  ;;  %p1627_p12 = scmp.lt.s32.totalorder %s2381_s2, %s2493_s16 }
 0x23e   : > { %p1628_p11 = scmp.lt.s32.totalorder %s1626_s7, %s1622_s12 }
 0x23f   : > { %p1624_p0 = pnand %p1623_p9, %p1823_p3 }
 0x240   : > { %p1629_p13 = por %p1628_p11, %p1627_p12 }
 0x241   : > { %p1625_p10 = pneg %p1624_p0 }
 0x243   : > { %p1630_p1 = pnand %p1629_p13, %p1625_p10 }
 0x245   : > { %1633 = shalt.err (!%p1630_p1)
}
 0x246   : > { %s1739_s30 = smov 128   ;;  %s1740_s28 = smov 8  }
 0x247   : > { %1291 = dma.vmem_to_hbm [thread:$0]  (%p1823_p3), %s2383_s26, 1024, %s2381_s2, %s2390_s29, %s1739_s30, %s1739_s30, %s1740_s28  }
 0x248 PF: > { %s2495_s9 = sld [smem:[#allocation33_spill]] }
 0x249   : > { %s2496_s27 = sld [smem:[#allocation28_spill]] }
 0x24a   : > { %s2497_s19 = sld [smem:[#allocation37_spill]] }
 0x24e   : > { %p1314_p8 = scmp.ge.s32.totalorder %s2495_s9, 2 }
 0x24f   : > { %s922_s13 = sand.u32 1, %s2496_s27  }
 0x250   : > { %p2498_p4 = scmp.ne.s32.totalorder %s2497_s19, 0  ;;  %s923_s14 = scalar_lea.sflag [#allocation6], %s922_s13 }
 0x252   : > { %p1301_p5 = pnand %p1314_p8, %p2498_p4 }
 0x254   : > { %p1302_p2 = pneg %p1301_p5 }
 0x256   : > { %1685 = dma.done.wait (%p1302_p2), %s923_s14, 1024  }
 0x257   : > { %1687 = vsyncadd (%p1302_p2), %s923_s14, 4294966272  ;;  %s20_s25 = sadd.s32 1, %s2495_s9   ;;  %s2499_s18 = sld [smem:[#allocation29_spill]] }
 0x258   : > { %p17_p6 = scmp.ge.s32.totalorder %s20_s25, 10   ;;  %s2500_s19 = sld [smem:[#allocation30_spill]] }
 0x259   : > { %s2501_s20 = sld [smem:[#allocation38_spill]] }
 0x25a   : > { %s2502_s21 = sld [smem:[#allocation31_spill]]  ;;  %19 = sbr.rel (!%p17_p6) target bundleno = 13 (0xd), region = 180 }
 0x25b   : > { %s2503_s22 = sld [smem:[#allocation32_spill]] }
 0x25c   : > { %s2504_s23 = sld [smem:[#allocation34_spill]] }
 0x25d   : > { %s2505_s24 = sld [smem:[#allocation36_spill]] }
 0x25f   :  { %928 = vsyncpa [#allocation5], 1 }
 0x260   :  { %930 = vsyncpa [#allocation5 + $0x1], 1 }
 0x261   :  { %931 = vsyncpa [#allocation8], 1 }
 0x262   :  { %932 = vsyncpa [#allocation6], 1 }
 0x263   :  { %934 = vsyncpa [#allocation6 + $0x1], 1 }
 0x264   :  { %935 = vsyncmov [#allocation3] }
 0x267   :  { %s936_s11 = vpop.sfrf %935 }
 0x268   :  { %p1207_p3 = scmp.ne.s32.totalorder %s936_s11, 0 }
 0x26a   :  { %940 = shalt.err (%p1207_p3)  }
 0x26b   :  { %942 = vsyncmov [#allocation3 + $0x1] }
 0x26e   :  { %s943_s10 = vpop.sfrf %942 }
 0x26f   :  { %p1208_p7 = scmp.ne.s32.totalorder %s943_s10, 0 }
 0x271   :  { %947 = shalt.err (%p1208_p7)  }
 0x272   :  { %949 = vsyncmov [#allocation3 + $0x2] }
 0x275   :  { %s950_s6 = vpop.sfrf %949 }
 0x276   :  { %p1209_p9 = scmp.ne.s32.totalorder %s950_s6, 0 }
 0x278   :  { %954 = shalt.err (%p1209_p9)  }
 0x279   :  { %956 = vsyncmov [#allocation3 + $0x3] }
 0x27c   :  { %s957_s17 = vpop.sfrf %956 }
 0x27d   :  { %p1210_p0 = scmp.ne.s32.totalorder %s957_s17, 0 }
 0x27f   :  { %961 = shalt.err (%p1210_p0)  }
 0x280   :  { %963 = vsyncmov [#allocation3 + $0x4] }
 0x283   :  { %s964_s0 = vpop.sfrf %963 }
 0x284   :  { %p1211_p10 = scmp.ne.s32.totalorder %s964_s0, 0 }
 0x286   :  { %968 = shalt.err (%p1211_p10)  }
 0x287   :  { %970 = vsyncmov [#allocation3 + $0x5] }
 0x28a   :  { %s971_s21 = vpop.sfrf %970 }
 0x28b   :  { %p1212_p12 = scmp.ne.s32.totalorder %s971_s21, 0 }
 0x28d   :  { %975 = shalt.err (%p1212_p12)  }

</bundles_post_ra>
